<compile_context>
chip_gen: v5e
topology: v5e:2x2
jax: 0.10.0
libtpu: 0.0.40
codegen_flags: <defaults>
</compile_context>

<pallas_src>
import jax
import jax.numpy as jnp
from jax.experimental import pallas as pl
from jax.experimental.pallas import tpu as pltpu

GNN_HIDDEN_DIM = 64
GNN_NUM_LAYERS = 3


def _gnn_kernel(a_ref, x_ref, w_ref, b_ref, o_ref):
    """One grid step = TILE_B graphs flattened to M = TILE_B*N rows.

    a_ref: (M, M)          bf16  block-diagonal adjacency for the TILE_B graphs
    x_ref: (M, D)          bf16  node features
    w_ref: (4, D, D)       bf16  [layer0, layer1, layer2, output], stored [D_in, D_out]
    b_ref: (4, 1, D)       f32   matching biases
    o_ref: (M, D)          f32
    """
    a = a_ref[...]
    x = x_ref[...]
    for l in range(GNN_NUM_LAYERS):
        # Message passing: one dense MXU matmul thanks to the block-diagonal A.
        m = jnp.dot(a, x, preferred_element_type=jnp.float32)
        # Linear layer (MXU, bf16 inputs / f32 accumulation).
        h = jnp.dot(m.astype(jnp.bfloat16), w_ref[l],
                    preferred_element_type=jnp.float32)
        # Bias + ReLU in f32 on the VPU; keep activations bf16 for the next matmul.
        x = jnp.maximum(h + b_ref[l], 0.0).astype(jnp.bfloat16)
        # TODO(synk): nn.Dropout(p=0.1) is identity in eval mode; training-mode
        # RNG dropout not implemented.
    out = jnp.dot(x, w_ref[GNN_NUM_LAYERS],
                  preferred_element_type=jnp.float32) + b_ref[GNN_NUM_LAYERS]
    o_ref[...] = out


def _pick_tile_b(bsz: int, n: int) -> int:
    """Largest TILE_B dividing bsz with TILE_B*N <= 256 (v6e/v7x MXU row
    granularity; also a multiple of the v5e 128-row MXU when N | 128), preferring
    >= 2 grid steps so both v7x TensorCores receive 'parallel' work."""
    max_tb = max(1, 256 // max(n, 1))
    divisors = [d for d in range(1, bsz + 1) if bsz % d == 0 and d <= max_tb]
    multi_step = [d for d in divisors if bsz // d >= 2]
    return max(multi_step) if multi_step else max(divisors)


@jax.jit
def gnn_forward(node_features, adjacency_matrix, params):
    """node_features: [B, N, 64] (or [N, 64]); adjacency_matrix: [B, N, N] (or [N, N]).
    params: dict with 'w0','b0','w1','b1','w2','b2','wo','bo'
    (weights stored [D_in, D_out], i.e. transposed vs torch Linear)."""
    single = node_features.ndim == 2
    x = node_features[None] if single else node_features
    a = adjacency_matrix[None] if single else adjacency_matrix

    bsz, n, d = x.shape
    assert d == GNN_HIDDEN_DIM
    assert a.shape == (bsz, n, n)

    tile_b = _pick_tile_b(bsz, n)
    nb = bsz // tile_b
    m_rows = tile_b * n

    # bf16 matmul inputs (accumulation stays f32 in-kernel).
    x_bf = x.astype(jnp.bfloat16).reshape(nb, m_rows, d)

    # Block-diagonal adjacency per grid step: (nb, M, M) with M = TILE_B * N.
    a_blk = a.astype(jnp.bfloat16).reshape(nb, tile_b, n, n)
    eye = jnp.eye(tile_b, dtype=jnp.bfloat16)
    a_bd = (a_blk[:, :, :, None, :] * eye[None, :, None, :, None]).reshape(
        nb, m_rows, m_rows)

    # Fold weights / biases into single VMEM-resident operands.
    w_stack = jnp.stack(
        [params["w0"], params["w1"], params["w2"], params["wo"]]
    ).astype(jnp.bfloat16)                                    # (4, D, D)
    b_stack = jnp.stack(
        [params["b0"], params["b1"], params["b2"], params["bo"]]
    ).astype(jnp.float32)[:, None, :]                         # (4, 1, D)

    per_step = lambda i: (i, 0, 0)   # batch-of-graphs slab for this grid step
    resident = lambda i: (0, 0, 0)   # same block every step -> stays in VMEM

    out = pl.pallas_call(
        _gnn_kernel,
        out_shape=jax.ShapeDtypeStruct((nb, m_rows, d), jnp.float32),
        grid=(nb,),
        in_specs=[
            pl.BlockSpec((None, m_rows, m_rows), per_step),            # block-diag A
            pl.BlockSpec((None, m_rows, d), per_step),                 # X
            pl.BlockSpec((GNN_NUM_LAYERS + 1, d, d), resident),        # weights
            pl.BlockSpec((GNN_NUM_LAYERS + 1, 1, d), resident),        # biases
        ],
        out_specs=pl.BlockSpec((None, m_rows, d), per_step),
        compiler_params=pltpu.CompilerParams(
            dimension_semantics=("parallel",)),
    )(a_bd, x_bf, w_stack, b_stack)

    out = out.reshape(bsz, n, d)
    return out[0] if single else out


def init_params(key, d=GNN_HIDDEN_DIM, num_layers=GNN_NUM_LAYERS):
    """Deterministic PyTorch-style init: U(-1/sqrt(fan_in), 1/sqrt(fan_in))."""
    params = {}
    bound = 1.0 / jnp.sqrt(float(d))
    keys = jax.random.split(key, 2 * (num_layers + 1))
    names = [f"{i}" for i in range(num_layers)] + ["o"]
    for idx, name in enumerate(names):
        wk, bk = keys[2 * idx], keys[2 * idx + 1]
        # weight stored as [D_in, D_out] (transpose of torch Linear's [out, in])
        params[f"w{name}"] = jax.random.uniform(wk, (d, d), jnp.float32,
                                                -bound, bound)
        params[f"b{name}"] = jax.random.uniform(bk, (d,), jnp.float32,
                                                -bound, bound)
    return params


def _gnn_reference_f32(x, a, params):
    """Pure-JAX float32 reference (matches the PyTorch module in eval mode)."""
    x = x.astype(jnp.float32)
    a = a.astype(jnp.float32)
    for i in range(GNN_NUM_LAYERS):
        x = jnp.maximum(jnp.matmul(a, x) @ params[f"w{i}"] + params[f"b{i}"], 0.0)
    return jnp.matmul(x, params["wo"]) + params["bo"]


def _gnn_reference_bf16(x, a, params):
    """Precision-matched reference (same bf16 casts / f32 accumulation as kernel)."""
    bf = jnp.bfloat16
    x = x.astype(bf)
    a = a.astype(bf)
    for i in range(GNN_NUM_LAYERS):
        m = jnp.matmul(a, x, preferred_element_type=jnp.float32)
        h = jnp.matmul(m.astype(bf), params[f"w{i}"].astype(bf),
                       preferred_element_type=jnp.float32)
        x = jnp.maximum(h + params[f"b{i}"], 0.0).astype(bf)
    return jnp.matmul(x, params["wo"].astype(bf),
                      preferred_element_type=jnp.float32) + params["bo"]


if __name__ == "__main__":
    key = jax.random.PRNGKey(0)
    k_params, k_x, k_adj = jax.random.split(key, 3)

    batch = 64          # -> TILE_B=32, M=256 rows per step, grid=(2,) parallel
    num_nodes = 8
    d = GNN_HIDDEN_DIM

    params = init_params(k_params, d)

    node_features = jax.random.normal(k_x, (batch, num_nodes, d), jnp.float32)
    # symmetric, row-normalized adjacency with self loops (deterministic), per graph
    raw = jax.random.uniform(k_adj, (batch, num_nodes, num_nodes), jnp.float32)
    adj = (raw > 0.5).astype(jnp.float32)
    adj = jnp.maximum(adj, jnp.swapaxes(adj, -1, -2)) + jnp.eye(
        num_nodes, dtype=jnp.float32)
    adj = adj / jnp.sum(adj, axis=-1, keepdims=True)

    out = jax.block_until_ready(gnn_forward(node_features, adj, params))
    assert out.shape == (batch, num_nodes, d)
    assert out.dtype == jnp.float32

    # Precision-matched check (same bf16 inputs / f32 accumulation as the kernel).
    ref_bf = jax.block_until_ready(_gnn_reference_bf16(node_features, adj, params))
    assert float(jnp.max(jnp.abs(out - ref_bf))) < 5e-2
    # Loose check vs the float32 PyTorch-equivalent math (expected bf16 drift).
    ref_f32 = jax.block_until_ready(_gnn_reference_f32(node_features, adj, params))
    assert float(jnp.max(jnp.abs(out - ref_f32))) < 2.5e-1

    print("KERNEL_OK")
</pallas_src>

<mosaic_0001>
module attributes {stable_mosaic.version = 11 : i64} {
  func.func @_gnn_kernel(%arg0: i32, %arg1: memref<1x256x256xbf16, #tpu.memory_space<vmem>>, %arg2: memref<1x256x64xbf16, #tpu.memory_space<vmem>>, %arg3: memref<4x64x64xbf16, #tpu.memory_space<vmem>>, %arg4: memref<4x1x64xf32, #tpu.memory_space<vmem>>, %arg5: memref<1x256x64xf32, #tpu.memory_space<vmem>>) attributes {dimension_semantics = [#tpu.dimension_semantics<parallel>], iteration_bounds = array<i64: 2>, scalar_prefetch = 0 : i64, scratch_operands = 0 : i64, tpu.core_type = #tpu.core_type<tc>, window_params = [{transform_indices = @transform_0, window_bounds = array<i64: 1, 256, 256>}, {transform_indices = @transform_1, window_bounds = array<i64: 1, 256, 64>}, {pipeline_mode = #tpu.pipeline_mode<synchronous>, transform_indices = @transform_2, window_bounds = array<i64: 4, 64, 64>}, {pipeline_mode = #tpu.pipeline_mode<synchronous>, transform_indices = @transform_3, window_bounds = array<i64: 4, 1, 64>}, {transform_indices = @transform_4, window_bounds = array<i64: 1, 256, 64>}]} {
    %c0 = arith.constant 0 : index
    %c0_0 = arith.constant 0 : index
    %c0_1 = arith.constant 0 : index
    %0 = vector.load %arg1[%c0, %c0_0, %c0_1] : memref<1x256x256xbf16, #tpu.memory_space<vmem>>, vector<1x256x256xbf16>
    %1 = vector.shape_cast %0 : vector<1x256x256xbf16> to vector<256x256xbf16>
    %c0_2 = arith.constant 0 : index
    %c0_3 = arith.constant 0 : index
    %c0_4 = arith.constant 0 : index
    %2 = vector.load %arg2[%c0_2, %c0_3, %c0_4] : memref<1x256x64xbf16, #tpu.memory_space<vmem>>, vector<1x256x64xbf16>
    %3 = vector.shape_cast %2 : vector<1x256x64xbf16> to vector<256x64xbf16>
    %cst = arith.constant dense<0.000000e+00> : vector<256x64xf32>
    %4 = tpu.matmul %1, %3, %cst {dimension_numbers = #tpu.dot_dimension_numbers<[1], [0], [0], [1], [0, 0, 1, 1], [], []>} : vector<256x256xbf16>, vector<256x64xbf16>, vector<256x64xf32> -> vector<256x64xf32>
    %5 = arith.truncf %4 : vector<256x64xf32> to vector<256x64xbf16>
    %c0_5 = arith.constant 0 : index
    %c0_6 = arith.constant 0 : index
    %c0_7 = arith.constant 0 : index
    %6 = vector.load %arg3[%c0_5, %c0_6, %c0_7] : memref<4x64x64xbf16, #tpu.memory_space<vmem>>, vector<1x64x64xbf16>
    %7 = vector.shape_cast %6 : vector<1x64x64xbf16> to vector<64x64xbf16>
    %cst_8 = arith.constant dense<0.000000e+00> : vector<256x64xf32>
    %8 = tpu.matmul %5, %7, %cst_8 {dimension_numbers = #tpu.dot_dimension_numbers<[1], [0], [0], [1], [0, 0, 1, 1], [], []>} : vector<256x64xbf16>, vector<64x64xbf16>, vector<256x64xf32> -> vector<256x64xf32>
    %c0_9 = arith.constant 0 : index
    %c0_10 = arith.constant 0 : index
    %c0_11 = arith.constant 0 : index
    %9 = vector.load %arg4[%c0_9, %c0_10, %c0_11] : memref<4x1x64xf32, #tpu.memory_space<vmem>>, vector<1x1x64xf32>
    %10 = vector.shape_cast %9 : vector<1x1x64xf32> to vector<1x64xf32>
    %11 = vector.broadcast %10 : vector<1x64xf32> to vector<256x64xf32>
    %12 = arith.addf %8, %11 : vector<256x64xf32>
    %cst_12 = arith.constant 0.000000e+00 : f32
    %13 = vector.broadcast %cst_12 : f32 to vector<256x64xf32>
    %14 = arith.maximumf %12, %13 : vector<256x64xf32>
    %15 = arith.truncf %14 : vector<256x64xf32> to vector<256x64xbf16>
    %cst_13 = arith.constant dense<0.000000e+00> : vector<256x64xf32>
    %16 = tpu.matmul %1, %15, %cst_13 {dimension_numbers = #tpu.dot_dimension_numbers<[1], [0], [0], [1], [0, 0, 1, 1], [], []>} : vector<256x256xbf16>, vector<256x64xbf16>, vector<256x64xf32> -> vector<256x64xf32>
    %17 = arith.truncf %16 : vector<256x64xf32> to vector<256x64xbf16>
    %c1 = arith.constant 1 : index
    %c0_14 = arith.constant 0 : index
    %c0_15 = arith.constant 0 : index
    %18 = vector.load %arg3[%c1, %c0_14, %c0_15] : memref<4x64x64xbf16, #tpu.memory_space<vmem>>, vector<1x64x64xbf16>
    %19 = vector.shape_cast %18 : vector<1x64x64xbf16> to vector<64x64xbf16>
    %cst_16 = arith.constant dense<0.000000e+00> : vector<256x64xf32>
    %20 = tpu.matmul %17, %19, %cst_16 {dimension_numbers = #tpu.dot_dimension_numbers<[1], [0], [0], [1], [0, 0, 1, 1], [], []>} : vector<256x64xbf16>, vector<64x64xbf16>, vector<256x64xf32> -> vector<256x64xf32>
    %c1_17 = arith.constant 1 : index
    %c0_18 = arith.constant 0 : index
    %c0_19 = arith.constant 0 : index
    %21 = vector.load %arg4[%c1_17, %c0_18, %c0_19] : memref<4x1x64xf32, #tpu.memory_space<vmem>>, vector<1x1x64xf32>
    %22 = vector.shape_cast %21 : vector<1x1x64xf32> to vector<1x64xf32>
    %23 = vector.broadcast %22 : vector<1x64xf32> to vector<256x64xf32>
    %24 = arith.addf %20, %23 : vector<256x64xf32>
    %cst_20 = arith.constant 0.000000e+00 : f32
    %25 = vector.broadcast %cst_20 : f32 to vector<256x64xf32>
    %26 = arith.maximumf %24, %25 : vector<256x64xf32>
    %27 = arith.truncf %26 : vector<256x64xf32> to vector<256x64xbf16>
    %cst_21 = arith.constant dense<0.000000e+00> : vector<256x64xf32>
    %28 = tpu.matmul %1, %27, %cst_21 {dimension_numbers = #tpu.dot_dimension_numbers<[1], [0], [0], [1], [0, 0, 1, 1], [], []>} : vector<256x256xbf16>, vector<256x64xbf16>, vector<256x64xf32> -> vector<256x64xf32>
    %29 = arith.truncf %28 : vector<256x64xf32> to vector<256x64xbf16>
    %c2 = arith.constant 2 : index
    %c0_22 = arith.constant 0 : index
    %c0_23 = arith.constant 0 : index
    %30 = vector.load %arg3[%c2, %c0_22, %c0_23] : memref<4x64x64xbf16, #tpu.memory_space<vmem>>, vector<1x64x64xbf16>
    %31 = vector.shape_cast %30 : vector<1x64x64xbf16> to vector<64x64xbf16>
    %cst_24 = arith.constant dense<0.000000e+00> : vector<256x64xf32>
    %32 = tpu.matmul %29, %31, %cst_24 {dimension_numbers = #tpu.dot_dimension_numbers<[1], [0], [0], [1], [0, 0, 1, 1], [], []>} : vector<256x64xbf16>, vector<64x64xbf16>, vector<256x64xf32> -> vector<256x64xf32>
    %c2_25 = arith.constant 2 : index
    %c0_26 = arith.constant 0 : index
    %c0_27 = arith.constant 0 : index
    %33 = vector.load %arg4[%c2_25, %c0_26, %c0_27] : memref<4x1x64xf32, #tpu.memory_space<vmem>>, vector<1x1x64xf32>
    %34 = vector.shape_cast %33 : vector<1x1x64xf32> to vector<1x64xf32>
    %35 = vector.broadcast %34 : vector<1x64xf32> to vector<256x64xf32>
    %36 = arith.addf %32, %35 : vector<256x64xf32>
    %cst_28 = arith.constant 0.000000e+00 : f32
    %37 = vector.broadcast %cst_28 : f32 to vector<256x64xf32>
    %38 = arith.maximumf %36, %37 : vector<256x64xf32>
    %39 = arith.truncf %38 : vector<256x64xf32> to vector<256x64xbf16>
    %c3 = arith.constant 3 : index
    %c0_29 = arith.constant 0 : index
    %c0_30 = arith.constant 0 : index
    %40 = vector.load %arg3[%c3, %c0_29, %c0_30] : memref<4x64x64xbf16, #tpu.memory_space<vmem>>, vector<1x64x64xbf16>
    %41 = vector.shape_cast %40 : vector<1x64x64xbf16> to vector<64x64xbf16>
    %cst_31 = arith.constant dense<0.000000e+00> : vector<256x64xf32>
    %42 = tpu.matmul %39, %41, %cst_31 {dimension_numbers = #tpu.dot_dimension_numbers<[1], [0], [0], [1], [0, 0, 1, 1], [], []>} : vector<256x64xbf16>, vector<64x64xbf16>, vector<256x64xf32> -> vector<256x64xf32>
    %c3_32 = arith.constant 3 : index
    %c0_33 = arith.constant 0 : index
    %c0_34 = arith.constant 0 : index
    %43 = vector.load %arg4[%c3_32, %c0_33, %c0_34] : memref<4x1x64xf32, #tpu.memory_space<vmem>>, vector<1x1x64xf32>
    %44 = vector.shape_cast %43 : vector<1x1x64xf32> to vector<1x64xf32>
    %45 = vector.broadcast %44 : vector<1x64xf32> to vector<256x64xf32>
    %46 = arith.addf %42, %45 : vector<256x64xf32>
    %c0_35 = arith.constant 0 : index
    %c0_36 = arith.constant 0 : index
    %c0_37 = arith.constant 0 : index
    %47 = vector.load %arg5[%c0_35, %c0_36, %c0_37] : memref<1x256x64xf32, #tpu.memory_space<vmem>>, vector<1x256x64xf32>
    %48 = vector.shape_cast %47 : vector<1x256x64xf32> to vector<256x64xf32>
    %49 = vector.shape_cast %46 : vector<256x64xf32> to vector<1x256x64xf32>
    tpu.vector_store %arg5[%c0_35, %c0_36, %c0_37], %49 {strides = array<i32>} : memref<1x256x64xf32, #tpu.memory_space<vmem>>, vector<1x256x64xf32>,
    return
  }
  func.func @transform_0(%arg0: i32) -> (i32, i32, i32) {
    %c0_i32 = arith.constant 0 : i32
    %c0_i32_0 = arith.constant 0 : i32
    %c0_i32_1 = arith.constant 0 : i32
    return %arg0, %c0_i32, %c0_i32_0 : i32, i32, i32
  }
  func.func @transform_1(%arg0: i32) -> (i32, i32, i32) {
    %c0_i32 = arith.constant 0 : i32
    %c0_i32_0 = arith.constant 0 : i32
    %c0_i32_1 = arith.constant 0 : i32
    return %arg0, %c0_i32, %c0_i32_0 : i32, i32, i32
  }
  func.func @transform_2(%arg0: i32) -> (i32, i32, i32) {
    %c0_i32 = arith.constant 0 : i32
    %c0_i32_0 = arith.constant 0 : i32
    %c0_i32_1 = arith.constant 0 : i32
    %c0_i32_2 = arith.constant 0 : i32
    return %c0_i32, %c0_i32_0, %c0_i32_1 : i32, i32, i32
  }
  func.func @transform_3(%arg0: i32) -> (i32, i32, i32) {
    %c0_i32 = arith.constant 0 : i32
    %c0_i32_0 = arith.constant 0 : i32
    %c0_i32_1 = arith.constant 0 : i32
    %c0_i32_2 = arith.constant 0 : i32
    return %c0_i32, %c0_i32_0, %c0_i32_1 : i32, i32, i32
  }
  func.func @transform_4(%arg0: i32) -> (i32, i32, i32) {
    %c0_i32 = arith.constant 0 : i32
    %c0_i32_0 = arith.constant 0 : i32
    %c0_i32_1 = arith.constant 0 : i32
    return %arg0, %c0_i32, %c0_i32_0 : i32, i32, i32
  }
}

</mosaic_0001>

<bundles_post_ra>
// kernel: gnn_forward.1
= control target key start
LH: loop header
LB: loop body
LE: loop exit
PB: predicated region body
PF: predicated region fallthrough
CT: control target
= control target key end

     0   :  { %9 = vsyncpa [#allocation3], 0  ;;  %s3407_s0 = inlined_call_operand.vmem [shape: bf16[2,256,256], index: 0, kind: input, shape index: {}]   ;;  %s3408_s1 = inlined_call_operand.vmem [shape: bf16[2,256,64], index: 1, kind: input, shape index: {}]   ;;  %s3409_s2 = inlined_call_operand.vmem [shape: bf16[4,64,64], index: 2, kind: input, shape index: {}]   ;;  %s3410_s3 = inlined_call_operand.vmem [shape: f32[4,1,64], index: 3, kind: input, shape index: {}]   ;;  %s3411_s4 = inlined_call_operand.hbm [shape: f32[2,256,64], index: 4, kind: output, shape index: {}]  }
   0x1   :  { %11 = vsyncpa [#allocation3 + $0x1], 0  ;;  %s2660_s15 = smov 0   ;;  %s2662_s16 = smov 0  }
   0x2   :  { %s2664_s17 = smov 0   ;;  %s2666_s18 = smov 0  }
   0x3 LB: > { %s2681_s19 = sadd.s32 4294967295, %s2631_s18   ;;  %s2084_s20 = sadd.s32 4294967294, %s2631_s18   ;;  %s2631_s18 = sphi %s2666_s18, %s3421_s18   ;;  %s2627_s17 = sphi %s2664_s17, %s3420_s17   ;;  %s2623_s16 = sphi %s2662_s16, %s3419_s16   ;;  %s2619_s15 = sphi %s2660_s15, %s3418_s15  }
   0x4   : > { %s2685_s21 = sadd.s32 1, %s2631_s18   ;;  %s118_s22 = sadd.s32 1, %s2627_s17 }
   0x5   : > { %s115_s23 = ssub.s32 %s2631_s18, %s2685_s21  ;;  %p128_p0 = scmp.ne.s32.totalorder %s2627_s17, %s2623_s16 }
   0x6   : > { %p116_p1 = scmp.eq.s32.totalorder %s115_s23, 0  ;;  %p129_p2 = scmp.eq.s32.totalorder %s2681_s19, 1 }
   0x7   : > { %p134_p3 = scmp.ne.s32.totalorder %s2623_s16, %s2619_s15  ;;  %p135_p4 = scmp.eq.s32.totalorder %s2084_s20, 1 }
   0x8   : > { %s2696_s24 = scalar_select %p116_p1, %s2627_s17, %s118_s22  }
   0x9   : > { %p2698_p5 = por %p129_p2, %p128_p0  ;;  %p2702_p6 = por %p135_p4, %p134_p3 }
   0xa   : > { %p2087_p7 = scmp.ge.s32.totalorder %s2631_s18, 1  ;;  %p175_p8 = scmp.lt.s32.totalorder %s2631_s18, 3 }
   0xc   : > { %p176_p9 = pnand %p2087_p7, %p175_p8 }
   0xe   : > { %179 = sbr.rel (%p176_p9) target bundleno = 1965 (0x7ad), region = 36 }
  0x13   : > { %p206_p10 = scmp.lt.s32.totalorder %s2681_s19, 1  ;;  %vm767_vm0 = vcmask 523264   ;;  %s203_s14 = sand.u32 1, %s2623_s16  }
  0x14   : > { %s2088_s20 = sshll.u32 %s203_s14, 8  ;;  %s2589_s12 = scalar_lea.hbm %s3411_s4, 512 }
  0x15   : > { %s207_s27 = scalar_select %p206_p10, %s2681_s19, 1 }
  0x17   : > { %s2446_s28 = sshll.u32 %s207_s27, 7  ;;  %s2445_s6 = sshll.u32 %s207_s27, 8 }
  0x18   : > { %s2713_s5 = scalar_lea.vmem %s3408_s1, %s2446_s28  ;;  %s2725_s9 = scalar_lea.vmem %s3407_s0, %s2445_s6 }
  0x19   : > { %v2486_v0 = vld [vmem:[%s2713_s5 + $0x38] sm:$0xff]  ;;  %v2485_v1 = vld [vmem:[%s2713_s5 + $0x30] sm:$0xff]  ;;  %v2484_v2 = vld [vmem:[%s2713_s5 + $0x28] sm:$0xff]  ;;  %s3254_s27 = scalar_lea.vmem [#allocation2], %s2088_s20  ;;  %s2511_s28 = sshll.u32 %s2681_s19, 8 }
  0x1a   : > { %2512 = vmatpush.bf16.msra.mxu1 %v2486_v0  ;;  %537 = vmatpush.bf16.msra.mxu0 %v2486_v0  ;;  %v2483_v3 = vld [vmem:[%s2713_s5 + $0x20] sm:$0xff]  ;;  %v2482_v4 = vld [vmem:[%s2713_s5 + $0x18] sm:$0xff]  ;;  %v2481_v5 = vld [vmem:[%s2713_s5 + $0x10] sm:$0xff]  ;;  %s2007_s6 = sshll.u32 %s3254_s27, 4  ;;  %s1995_s19 = scalar_lea.sflag [#allocation3], %s203_s14  ;;  %s2008_s6 = int_to_ptr.vmem [resolvable:$true] %s2007_s6 }
  0x1b   : > { %v2480_v6 = vld [vmem:[%s2713_s5 + $0x8] sm:$0xff]  ;;  %v2479_v7 = vld [vmem:[%s2713_s5] sm:$0xff]  ;;  %v2167_v11 = vld [vmem:[%s2725_s9 + $0x90] sm:$0xf] }
  0x1c   : > { %v2159_v8 = vld [vmem:[%s2725_s9 + $0x80] sm:$0xf]  ;;  %v2464_v9 = vld [vmem:[%s2725_s9 + $0x84] sm:$0xf0]  ;;  %v2466_v12 = vld [vmem:[%s2725_s9 + $0x94] sm:$0xf0] }
  0x1d   : > { %v2730_v10 = vor.u32 %v2464_v9, %v2159_v8  ;;  %v2735_v13 = vor.u32 %v2466_v12, %v2167_v11  ;;  %v2175_v14 = vld [vmem:[%s2725_s9 + $0xa0] sm:$0xf]  ;;  %v2468_v15 = vld [vmem:[%s2725_s9 + $0xa4] sm:$0xf0]  ;;  %v2183_v17 = vld [vmem:[%s2725_s9 + $0xb0] sm:$0xf] }
  0x1e   : > { %2513 = vmatpush.bf16.msra.mxu1 %v2485_v1  ;;  %538 = vmatpush.bf16.msra.mxu0 %v2485_v1  ;;  %v2740_v16 = vor.u32 %v2468_v15, %v2175_v14  ;;  %v2470_v18 = vld [vmem:[%s2725_s9 + $0xb4] sm:$0xf0]  ;;  %v2191_v20 = vld [vmem:[%s2725_s9 + $0xc0] sm:$0xf]  ;;  %v2472_v21 = vld [vmem:[%s2725_s9 + $0xc4] sm:$0xf0] }
  0x1f   : > { %v2745_v19 = vor.u32 %v2470_v18, %v2183_v17  ;;  %v2750_v22 = vor.u32 %v2472_v21, %v2191_v20  ;;  %v2494_v23 = vld [vmem:[%s2713_s5 + $0x78] sm:$0xff]  ;;  %v2493_v24 = vld [vmem:[%s2713_s5 + $0x70] sm:$0xff]  ;;  %v2492_v25 = vld [vmem:[%s2713_s5 + $0x68] sm:$0xff] }
  0x20   : > { %v2199_v26 = vld [vmem:[%s2725_s9 + $0xd0] sm:$0xf]  ;;  %v2474_v27 = vld [vmem:[%s2725_s9 + $0xd4] sm:$0xf0]  ;;  %v2491_v28 = vld [vmem:[%s2713_s5 + $0x60] sm:$0xff] }
  0x21   : > { %v2759_v29 = vor.u32 %v2474_v27, %v2199_v26  ;;  %v2490_v30 = vld [vmem:[%s2713_s5 + $0x58] sm:$0xff]  ;;  %v2489_v31 = vld [vmem:[%s2713_s5 + $0x50] sm:$0xff]  ;;  %v2488_v32 = vld [vmem:[%s2713_s5 + $0x48] sm:$0xff] }
  0x22   : > { %2514 = vmatpush.bf16.msra.mxu1 %v2484_v2  ;;  %539 = vmatpush.bf16.msra.mxu0 %v2484_v2  ;;  %v2207_v33 = vld [vmem:[%s2725_s9 + $0xe0] sm:$0xf]  ;;  %v2476_v34 = vld [vmem:[%s2725_s9 + $0xe4] sm:$0xf0]  ;;  %v2215_v40 = vld [vmem:[%s2725_s9 + $0xf0] sm:$0xf] }
  0x23   : > { %v2487_v35 = vld [vmem:[%s2713_s5 + $0x40] sm:$0xff]  ;;  %v2768_v36 = vor.u32 %v2476_v34, %v2207_v33  ;;  %v2448_v38 = vld [vmem:[%s2725_s9 + $0x4] sm:$0xf0]  ;;  %v2478_v41 = vld [vmem:[%s2725_s9 + $0xf4] sm:$0xf0]  ;;  %s2006_s5 = scalar_lea.hbm %s3411_s4, %s2511_s28 }
  0x24   : > { %v2095_v37 = vld [vmem:[%s2725_s9] sm:$0xf]  ;;  %v2778_v42 = vor.u32 %v2478_v41, %v2215_v40  ;;  %v2103_v43 = vld [vmem:[%s2725_s9 + $0x10] sm:$0xf]  ;;  %v2450_v44 = vld [vmem:[%s2725_s9 + $0x14] sm:$0xf0] }
  0x25   : > { %v2772_v39 = vor.u32 %v2448_v38, %v2095_v37  ;;  %v2782_v45 = vor.u32 %v2450_v44, %v2103_v43  ;;  %v2447_v46 = vld [vmem:[%s2725_s9 + $0x4] sm:$0xf]  ;;  %v2097_v47 = vld [vmem:[%s2725_s9 + $0x8] sm:$0xf0]  ;;  %v2111_v50 = vld [vmem:[%s2725_s9 + $0x20] sm:$0xf] }
  0x26   : > { %2515 = vmatpush.bf16.msra.mxu1 %v2483_v3  ;;  %540 = vmatpush.bf16.msra.mxu0 %v2483_v3  ;;  %v2788_v48 = vor.u32 %v2447_v46, %v2097_v47  ;;  %v2452_v51 = vld [vmem:[%s2725_s9 + $0x24] sm:$0xf0]  ;;  %v2449_v54 = vld [vmem:[%s2725_s9 + $0x14] sm:$0xf]  ;;  %v2105_v55 = vld [vmem:[%s2725_s9 + $0x18] sm:$0xf0] }
  0x27   : > { %v2794_v52 = vor.u32 %v2452_v51, %v2111_v50  ;;  %v2802_v56 = vor.u32 %v2449_v54, %v2105_v55  ;;  %v2119_v58 = vld [vmem:[%s2725_s9 + $0x30] sm:$0xf]  ;;  %v2454_v59 = vld [vmem:[%s2725_s9 + $0x34] sm:$0xf0]  ;;  %v2451_v62 = vld [vmem:[%s2725_s9 + $0x24] sm:$0xf] }
  0x28   : > { %v2808_v60 = vor.u32 %v2454_v59, %v2119_v58  ;;  %v2113_v63 = vld [vmem:[%s2725_s9 + $0x28] sm:$0xf0]  ;;  %v2127_v2 = vld [vmem:[%s2725_s9 + $0x40] sm:$0xf]  ;;  %v2456_v3 = vld [vmem:[%s2725_s9 + $0x44] sm:$0xf0] }
  0x29   : > { %v2816_v0 = vor.u32 %v2451_v62, %v2113_v63  ;;  %v2135_v11 = vld [vmem:[%s2725_s9 + $0x50] sm:$0xf]  ;;  %v2458_v12 = vld [vmem:[%s2725_s9 + $0x54] sm:$0xf0]  ;;  %v2455_v17 = vld [vmem:[%s2725_s9 + $0x44] sm:$0xf] }
  0x2a   : > { %2516 = vmatpush.bf16.msra.mxu1 %v2482_v4  ;;  %541 = vmatpush.bf16.msra.mxu0 %v2482_v4  ;;  %v2822_v4 = vor.u32 %v2456_v3, %v2127_v2  ;;  %v2836_v14 = vor.u32 %v2458_v12, %v2135_v11  ;;  %v2129_v18 = vld [vmem:[%s2725_s9 + $0x48] sm:$0xf0]  ;;  %v2457_v27 = vld [vmem:[%s2725_s9 + $0x54] sm:$0xf]  ;;  %v2462_v33 = vld [vmem:[%s2725_s9 + $0x74] sm:$0xf0] }
  0x2b   : > { %v2844_v20 = vor.u32 %v2455_v17, %v2129_v18  ;;  %v2498_v37 = vld [vmem:[%s3409_s2 + $0x18] sm:$0xff]  ;;  %v2459_v38 = vld [vmem:[%s2725_s9 + $0x64] sm:$0xf]  ;;  %v2145_v40 = vld [vmem:[%s2725_s9 + $0x68] sm:$0xf0]  ;;  %s2009_s7 = sshll.u32 %s2006_s5, 4  ;;  %s2010_s7 = int_to_ptr.hbm [resolvable:$true] %s2009_s7 }
  0x2c   : > { %820 = vmatpush.bf16.msra.mxu2 %v2498_v37  ;;  %2520 = vmatpush.bf16.msra.mxu3 %v2498_v37  ;;  %v2875_v41 = vor.u32 %v2459_v38, %v2145_v40  ;;  %v2497_v46 = vld [vmem:[%s3409_s2 + $0x10] sm:$0xff]  ;;  %v2496_v47 = vld [vmem:[%s3409_s2 + $0x8] sm:$0xff]  ;;  %v2495_v51 = vld [vmem:[%s3409_s2] sm:$0xff]  ;;  %s2583_s8 = sshra.s32 %s2010_s7, 4  ;;  %s2584_s8 = int_to_ptr.hbm [resolvable:$true] %s2583_s8 }
  0x2d   : > { %v2461_v55 = vld [vmem:[%s2725_s9 + $0x74] sm:$0xf]  ;;  %v2153_v58 = vld [vmem:[%s2725_s9 + $0x78] sm:$0xf0]  ;;  %v2463_v3 = vld [vmem:[%s2725_s9 + $0x84] sm:$0xf]  ;;  %p2590_p0 = scmp.lt.s32.totalorder %s2584_s8, %s3411_s4 }
  0x2e   : > { %2517 = vmatpush.bf16.msra.mxu1 %v2481_v5  ;;  %542 = vmatpush.bf16.msra.mxu0 %v2481_v5  ;;  %v2893_v59 = vor.u32 %v2461_v55, %v2153_v58 }
  0x30   : > { %821 = vmatpush.bf16.msra.mxu2 %v2497_v46  ;;  %2521 = vmatpush.bf16.msra.mxu3 %v2497_v46 }
  0x32   : > { %2518 = vmatpush.bf16.msra.mxu1 %v2480_v6  ;;  %543 = vmatpush.bf16.msra.mxu0 %v2480_v6  ;;  %v2453_v6 = vld [vmem:[%s2725_s9 + $0x34] sm:$0xf] }
  0x34   : > { %822 = vmatpush.bf16.msra.mxu2 %v2496_v47  ;;  %2522 = vmatpush.bf16.msra.mxu3 %v2496_v47 }
  0x36   : > { %2519 = vmatpush.bf16.msra.mxu1 %v2479_v7  ;;  %544 = vmatpush.bf16.msra.mxu0 %v2479_v7  ;;  %v2121_v7 = vld [vmem:[%s2725_s9 + $0x38] sm:$0xf0] }
  0x37   : > { %v2830_v8 = vor.u32 %v2453_v6, %v2121_v7  ;;  %v2161_v6 = vld [vmem:[%s2725_s9 + $0x88] sm:$0xf0] }
  0x38   : > { %823 = vmatpush.bf16.msra.mxu2 %v2495_v51  ;;  %2523 = vmatpush.bf16.msra.mxu3 %v2495_v51  ;;  %v2902_v11 = vor.u32 %v2463_v3, %v2161_v6  ;;  %v2467_v51 = vld [vmem:[%s2725_s9 + $0xa4] sm:$0xf] }
  0x39   : > { %585 = vmatmul.bf16.vlgmr.msra.gmra.mxu1 %v2730_v10  ;;  %545 = vmatmul.bf16.vlgmr.msra.gmra.mxu0 %v2772_v39 }
  0x3a   : > { %626 = vmatpush.bf16.msrb.mxu1 %v2494_v23  ;;  %v2143_v23 = vld [vmem:[%s2725_s9 + $0x60] sm:$0xf] }
  0x3e   : > { %627 = vmatpush.bf16.msrb.mxu1 %v2493_v24  ;;  %v2460_v24 = vld [vmem:[%s2725_s9 + $0x64] sm:$0xf0] }
  0x42   : > { %628 = vmatpush.bf16.msrb.mxu1 %v2492_v25  ;;  %v2850_v25 = vor.u32 %v2460_v24, %v2143_v23 }
  0x46   : > { %629 = vmatpush.bf16.msrb.mxu1 %v2491_v28  ;;  %v2137_v28 = vld [vmem:[%s2725_s9 + $0x58] sm:$0xf0] }
  0x49   : > { %590 = vmatmul.bf16.gmra.mxu1 %v2735_v13  ;;  %550 = vmatmul.bf16.gmra.mxu0 %v2782_v45 }
  0x4a   : > { %630 = vmatpush.bf16.msrb.mxu1 %v2490_v30  ;;  %v2858_v30 = vor.u32 %v2457_v27, %v2137_v28  ;;  %v2465_v28 = vld [vmem:[%s2725_s9 + $0x94] sm:$0xf] }
  0x4e   : > { %631 = vmatpush.bf16.msrb.mxu1 %v2489_v31 }
  0x52   : > { %632 = vmatpush.bf16.msrb.mxu1 %v2488_v32  ;;  %v2151_v32 = vld [vmem:[%s2725_s9 + $0x70] sm:$0xf] }
  0x53   : > { %v2864_v34 = vor.u32 %v2462_v33, %v2151_v32  ;;  %v2169_v32 = vld [vmem:[%s2725_s9 + $0x98] sm:$0xf0] }
  0x54   : > { %v2908_v33 = vor.u32 %v2465_v28, %v2169_v32 }
  0x56   : > { %633 = vmatpush.bf16.msrb.mxu1 %v2487_v35 }
  0x59   : > { %595 = vmatmul.bf16.gmra.mxu1 %v2740_v16  ;;  %555 = vmatmul.bf16.gmra.mxu0 %v2794_v52 }
  0x69   : > { %600 = vmatmul.bf16.gmra.mxu1 %v2745_v19  ;;  %560 = vmatmul.bf16.gmra.mxu0 %v2808_v60 }
  0x79   : > { %605 = vmatmul.bf16.gmra.mxu1 %v2750_v22  ;;  %565 = vmatmul.bf16.gmra.mxu0 %v2822_v4 }
  0x89   : > { %610 = vmatmul.bf16.gmra.mxu1 %v2759_v29  ;;  %570 = vmatmul.bf16.gmra.mxu0 %v2836_v14 }
  0x99   : > { %615 = vmatmul.bf16.gmra.mxu1 %v2768_v36  ;;  %575 = vmatmul.bf16.gmra.mxu0 %v2850_v25 }
  0xa9   : > { %620 = vmatmul.bf16.gmra.mxu1 %v2778_v42  ;;  %580 = vmatmul.bf16.gmra.mxu0 %v2864_v34 }
  0xb6   : > { %v2790_v49 = vpop.f32.mrf.mxu1  ;;  %v546_v44 = vpop.f32.mrf.mxu0 }
  0xb9   : > { %634 = vmatmul.bf16.vlgmr.msrb.gmra.mxu1 %v2788_v48 }
  0xbe   : > { %v2798_v53 = vpop.f32.mrf.mxu1  ;;  %v548_v54 = vpop.f32.mrf.mxu0 }
  0xc6   : > { %v2804_v57 = vpop.f32.mrf.mxu1  ;;  %v551_v63 = vpop.f32.mrf.mxu0 }
  0xc9   : > { %639 = vmatmul.bf16.gmra.mxu1 %v2802_v56 }
  0xce   : > { %v2812_v61 = vpop.f32.mrf.mxu1  ;;  %v553_v7 = vpop.f32.mrf.mxu0 }
  0xd6   : > { %v2818_v1 = vpop.f32.mrf.mxu1  ;;  %v556_v18 = vpop.f32.mrf.mxu0 }
  0xd9   : > { %644 = vmatmul.bf16.gmra.mxu1 %v2816_v0 }
  0xde   : > { %v2826_v5 = vpop.f32.mrf.mxu1  ;;  %v558_v38 = vpop.f32.mrf.mxu0 }
  0xe6   : > { %v2832_v9 = vpop.f32.mrf.mxu1  ;;  %v561_v55 = vpop.f32.mrf.mxu0 }
  0xe9   : > { %649 = vmatmul.bf16.gmra.mxu1 %v2830_v8 }
  0xee   : > { %v2840_v15 = vpop.f32.mrf.mxu1  ;;  %v563_v6 = vpop.f32.mrf.mxu0 }
  0xf6   : > { %v2846_v21 = vpop.f32.mrf.mxu1  ;;  %v566_v32 = vpop.f32.mrf.mxu0 }
  0xf9   : > { %654 = vmatmul.bf16.gmra.mxu1 %v2844_v20 }
  0xfe   : > { %v2854_v26 = vpop.f32.mrf.mxu1 }
 0x106   : > { %v2860_v31 = vpop.f32.mrf.mxu1 }
 0x109   : > { %659 = vmatmul.bf16.gmra.mxu1 %v2858_v30 }
 0x10e   : > { %v2868_v35 = vpop.f32.mrf.mxu1 }
 0x116   : > { %v2877_v43 = vpop.f32.mrf.mxu1 }
 0x119   : > { %664 = vmatmul.bf16.gmra.mxu1 %v2875_v41 }
 0x11e   : > { %v2886_v50 = vpop.f32.mrf.mxu1 }
 0x126   : > { %v2895_v62 = vpop.f32.mrf.mxu1 }
 0x129   : > { %669 = vmatmul.bf16.gmra.mxu1 %v2893_v59 }
 0x12e   : > { %v2898_v2 = vpop.f32.mrf.mxu1 }
 0x136   : > { %v635_v12 = vpop.f32.mrf.mxu1 }
 0x137   : > { %v636_v23 = vadd.f32 %v635_v12, %v546_v44 }
 0x139   : > { %674 = vmatmul.bf16.gmra.mxu1 %v2902_v11 }
 0x13e   : > { %v637_v17 = vpop.f32.mrf.mxu1 }
 0x13f   : > { %v638_v24 = vadd.f32 %v637_v17, %v548_v54  ;;  %v2177_v54 = vld [vmem:[%s2725_s9 + $0xa8] sm:$0xf0] }
 0x140   : > { %v2914_v58 = vor.u32 %v2467_v51, %v2177_v54 }
 0x141   : > { %v715_v27 = vpack.c.bf16 %v638_v24, %v636_v23  ;;  %v2469_v24 = vld [vmem:[%s2725_s9 + $0xb4] sm:$0xf] }
 0x143   : > { %2301 = vmatmul.msk.bf16.vlgmr.msra.gmra.mxu2 %vm767_vm0, %v715_v27 }
 0x146   : > { %v640_v37 = vpop.f32.mrf.mxu1 }
 0x147   : > { %v641_v46 = vadd.f32 %v640_v37, %v551_v63 }
 0x149   : > { %679 = vmatmul.bf16.gmra.mxu1 %v2908_v33 }
 0x14e   : > { %v642_v40 = vpop.f32.mrf.mxu1 }
 0x14f   : > { %v643_v47 = vadd.f32 %v642_v40, %v553_v7  ;;  %v2185_v7 = vld [vmem:[%s2725_s9 + $0xb8] sm:$0xf0] }
 0x150   : > { %v2920_v27 = vor.u32 %v2469_v24, %v2185_v7 }
 0x151   : > { %v716_v44 = vpack.c.bf16 %v643_v47, %v641_v46  ;;  %v568_v47 = vpop.f32.mrf.mxu0 }
 0x153   : > { %2302 = vmatmul.msk.bf16.gmra.mxu2 %vm767_vm0, %v716_v44  ;;  %v2471_v44 = vld [vmem:[%s2725_s9 + $0xc4] sm:$0xf] }
 0x156   : > { %v645_v3 = vpop.f32.mrf.mxu1 }
 0x157   : > { %v646_v17 = vadd.f32 %v645_v3, %v556_v18 }
 0x159   : > { %684 = vmatmul.bf16.gmra.mxu1 %v2914_v58  ;;  %v571_v3 = vpop.f32.mrf.mxu0 }
 0x15e   : > { %v647_v12 = vpop.f32.mrf.mxu1 }
 0x15f   : > { %v648_v23 = vadd.f32 %v647_v12, %v558_v38  ;;  %v2193_v38 = vld [vmem:[%s2725_s9 + $0xc8] sm:$0xf0] }
 0x160   : > { %v2926_v51 = vor.u32 %v2471_v44, %v2193_v38  ;;  %v2475_v44 = vld [vmem:[%s2725_s9 + $0xe4] sm:$0xf] }
 0x161   : > { %v717_v63 = vpack.c.bf16 %v648_v23, %v646_v17  ;;  %v573_v24 = vpop.f32.mrf.mxu0 }
 0x163   : > { %2303 = vmatmul.msk.bf16.gmra.mxu2 %vm767_vm0, %v717_v63  ;;  %v2473_v63 = vld [vmem:[%s2725_s9 + $0xd4] sm:$0xf] }
 0x166   : > { %v650_v28 = vpop.f32.mrf.mxu1 }
 0x167   : > { %v651_v40 = vadd.f32 %v650_v28, %v561_v55 }
 0x169   : > { %689 = vmatmul.bf16.gmra.mxu1 %v2920_v27 }
 0x16e   : > { %v652_v37 = vpop.f32.mrf.mxu1 }
 0x16f   : > { %v653_v46 = vadd.f32 %v652_v37, %v563_v6  ;;  %v2201_v6 = vld [vmem:[%s2725_s9 + $0xd8] sm:$0xf0] }
 0x170   : > { %v2932_v7 = vor.u32 %v2473_v63, %v2201_v6 }
 0x171   : > { %v718_v18 = vpack.c.bf16 %v653_v46, %v651_v40  ;;  %v576_v40 = vpop.f32.mrf.mxu0 }
 0x172   : > { %3416 = vst [vmem:[#allocation5_spill] sm:$0xff] %v2932_v7 }
 0x173   : > { %2304 = vmatmul.msk.bf16.gmra.mxu2 %vm767_vm0, %v718_v18 }
 0x176   : > { %v655_v54 = vpop.f32.mrf.mxu1 }
 0x177   : > { %v656_v17 = vadd.f32 %v655_v54, %v566_v32 }
 0x179   : > { %694 = vmatmul.bf16.gmra.mxu1 %v2926_v51 }
 0x17e   : > { %v657_v12 = vpop.f32.mrf.mxu1 }
 0x17f   : > { %v658_v23 = vadd.f32 %v657_v12, %v568_v47  ;;  %v2209_v47 = vld [vmem:[%s2725_s9 + $0xe8] sm:$0xf0]  ;;  %v578_v12 = vpop.f32.mrf.mxu0 }
 0x180   : > { %v2938_v38 = vor.u32 %v2475_v44, %v2209_v47 }
 0x181   : > { %v719_v55 = vpack.c.bf16 %v658_v23, %v656_v17 }
 0x183   : > { %2305 = vmatmul.msk.bf16.gmra.mxu2 %vm767_vm0, %v719_v55 }
 0x186   : > { %v660_v28 = vpop.f32.mrf.mxu1 }
 0x187   : > { %v661_v46 = vadd.f32 %v660_v28, %v571_v3  ;;  %v581_v6 = vpop.f32.mrf.mxu0  ;;  %v2217_v3 = vld [vmem:[%s2725_s9 + $0xf8] sm:$0xf0] }
 0x189   : > { %699 = vmatmul.bf16.gmra.mxu1 %v2932_v7  ;;  %v2477_v7 = vld [vmem:[%s2725_s9 + $0xf4] sm:$0xf]  ;;  %s2585_s9 = scalar_lea.hbm %s2584_s8, 256 }
 0x18a   : > { %p2586_p11 = scmp.ne.s32.totalorder %s2584_s8, %s2585_s9  ;;  %p2591_p1 = scmp.lt.s32.totalorder %s2589_s12, %s2585_s9 }
 0x18c   : > { %p2587_p12 = pnand %p2586_p11, %p2698_p5  ;;  %p2592_p2 = por %p2591_p1, %p2590_p0 }
 0x18e   : > { %v662_v37 = vpop.f32.mrf.mxu1  ;;  %p2588_p13 = pneg %p2587_p12 }
 0x18f   : > { %v663_v18 = vadd.f32 %v662_v37, %v573_v24  ;;  %v2944_v24 = vor.u32 %v2477_v7, %v2217_v3  ;;  %v583_v37 = vpop.f32.mrf.mxu0 }
 0x190   : > { %p2593_p3 = pnand %p2592_p2, %p2588_p13 }
 0x191   : > { %v720_v32 = vpack.c.bf16 %v663_v18, %v661_v46 }
 0x193   : > { %2306 = vmatmul.msk.bf16.gmra.mxu2 %vm767_vm0, %v720_v32 }
 0x196   : > { %v665_v54 = vpop.f32.mrf.mxu1 }
 0x197   : > { %v666_v23 = vadd.f32 %v665_v54, %v576_v40 }
 0x199   : > { %704 = vmatmul.bf16.gmra.mxu1 %v2938_v38 }
 0x19e   : > { %v667_v17 = vpop.f32.mrf.mxu1 }
 0x19f   : > { %v668_v55 = vadd.f32 %v667_v17, %v578_v12 }
 0x1a1   : > { %v721_v63 = vpack.c.bf16 %v668_v55, %v666_v23 }
 0x1a3   : > { %2307 = vmatmul.msk.bf16.gmra.mxu2 %vm767_vm0, %v721_v63 }
 0x1a6   : > { %v670_v28 = vpop.f32.mrf.mxu1 }
 0x1a7   : > { %v671_v18 = vadd.f32 %v670_v28, %v581_v6 }
 0x1a9   : > { %709 = vmatmul.bf16.gmra.mxu1 %v2944_v24 }
 0x1ae   : > { %v672_v46 = vpop.f32.mrf.mxu1 }
 0x1af   : > { %v673_v32 = vadd.f32 %v672_v46, %v583_v37 }
 0x1b1   : > { %v722_v44 = vpack.c.bf16 %v673_v32, %v671_v18 }
 0x1b3   : > { %2308 = vmatmul.msk.bf16.gmra.mxu2 %vm767_vm0, %v722_v44 }
 0x1b6   : > { %v675_v40 = vpop.f32.mrf.mxu1 }
 0x1b7   : > { %v676_v54 = vadd.f32 %v675_v40, %v2790_v49 }
 0x1be   : > { %v677_v47 = vpop.f32.mrf.mxu1 }
 0x1bf   : > { %v678_v12 = vadd.f32 %v677_v47, %v2798_v53 }
 0x1c1   : > { %v723_v17 = vpack.c.bf16 %v678_v12, %v676_v54 }
 0x1c3   : > { %2309 = vmatmul.msk.bf16.gmra.mxu2 %vm767_vm0, %v723_v17 }
 0x1c6   : > { %v680_v7 = vpop.f32.mrf.mxu1  ;;  %v2951_v23 = vpop.f32.mrf.mxu2 }
 0x1c7   : > { %v681_v6 = vadd.f32 %v680_v7, %v2804_v57 }
 0x1ce   : > { %v682_v55 = vpop.f32.mrf.mxu1  ;;  %v2953_v63 = vpop.f32.mrf.mxu2 }
 0x1cf   : > { %v683_v3 = vadd.f32 %v682_v55, %v2812_v61 }
 0x1d1   : > { %v724_v28 = vpack.c.bf16 %v683_v3, %v681_v6 }
 0x1d3   : > { %2310 = vmatmul.msk.bf16.vlgmr.msra.gmra.mxu3 %vm767_vm0, %v724_v28 }
 0x1d6   : > { %v685_v37 = vpop.f32.mrf.mxu1  ;;  %v2958_v49 = vpop.f32.mrf.mxu2 }
 0x1d7   : > { %v686_v18 = vadd.f32 %v685_v37, %v2818_v1 }
 0x1de   : > { %v687_v53 = vpop.f32.mrf.mxu1  ;;  %v2960_v46 = vpop.f32.mrf.mxu2 }
 0x1df   : > { %v688_v32 = vadd.f32 %v687_v53, %v2826_v5 }
 0x1e1   : > { %v725_v44 = vpack.c.bf16 %v688_v32, %v686_v18 }
 0x1e3   : > { %2311 = vmatmul.msk.bf16.gmra.mxu3 %vm767_vm0, %v725_v44 }
 0x1e6   : > { %v690_v40 = vpop.f32.mrf.mxu1  ;;  %v2965_v57 = vpop.f32.mrf.mxu2 }
 0x1e7   : > { %v691_v54 = vadd.f32 %v690_v40, %v2832_v9 }
 0x1ee   : > { %v692_v61 = vpop.f32.mrf.mxu1  ;;  %v2967_v47 = vpop.f32.mrf.mxu2 }
 0x1ef   : > { %v693_v12 = vadd.f32 %v692_v61, %v2840_v15 }
 0x1f1   : > { %v726_v17 = vpack.c.bf16 %v693_v12, %v691_v54 }
 0x1f3   : > { %2312 = vmatmul.msk.bf16.gmra.mxu3 %vm767_vm0, %v726_v17 }
 0x1f6   : > { %v695_v7 = vpop.f32.mrf.mxu1  ;;  %v840_v1 = vpop.f32.mrf.mxu2 }
 0x1f7   : > { %v696_v6 = vadd.f32 %v695_v7, %v2846_v21 }
 0x1fe   : > { %v697_v55 = vpop.f32.mrf.mxu1  ;;  %v842_v5 = vpop.f32.mrf.mxu2 }
 0x1ff   : > { %v698_v3 = vadd.f32 %v697_v55, %v2854_v26 }
 0x201   : > { %v727_v28 = vpack.c.bf16 %v698_v3, %v696_v6 }
 0x203   : > { %2313 = vmatmul.msk.bf16.gmra.mxu3 %vm767_vm0, %v727_v28 }
 0x206   : > { %v700_v37 = vpop.f32.mrf.mxu1  ;;  %v845_v53 = vpop.f32.mrf.mxu2 }
 0x207   : > { %v701_v15 = vadd.f32 %v700_v37, %v2860_v31 }
 0x20e   : > { %v702_v18 = vpop.f32.mrf.mxu1  ;;  %v847_v9 = vpop.f32.mrf.mxu2 }
 0x20f   : > { %v703_v32 = vadd.f32 %v702_v18, %v2868_v35 }
 0x211   : > { %v728_v44 = vpack.c.bf16 %v703_v32, %v701_v15 }
 0x213   : > { %2314 = vmatmul.msk.bf16.gmra.mxu3 %vm767_vm0, %v728_v44 }
 0x216   : > { %v705_v40 = vpop.f32.mrf.mxu1  ;;  %v850_v61 = vpop.f32.mrf.mxu2 }
 0x217   : > { %v706_v26 = vadd.f32 %v705_v40, %v2877_v43  ;;  %v2987_v43 = vld [vmem:[%s3410_s3] ss:$0 sm:$0xff] }
 0x21e   : > { %v707_v54 = vpop.f32.mrf.mxu1  ;;  %v852_v21 = vpop.f32.mrf.mxu2 }
 0x21f   : > { %v708_v12 = vadd.f32 %v707_v54, %v2886_v50  ;;  %v853_v40 = vadd.f32 %v2987_v43, %v852_v21  ;;  %v841_v21 = vadd.f32 %v2987_v43, %v840_v1  ;;  %v831_v1 = vadd.f32 %v2987_v43, %v2958_v49 }
 0x221   : > { %v729_v17 = vpack.c.bf16 %v708_v12, %v706_v26  ;;  %v851_v12 = vadd.f32 %v2987_v43, %v850_v61  ;;  %v838_v61 = vadd.f32 %v2987_v43, %v2967_v47  ;;  %v828_v47 = vadd.f32 %v2987_v43, %v2953_v63 }
 0x223   : > { %2315 = vmatmul.msk.bf16.gmra.mxu3 %vm767_vm0, %v729_v17 }
 0x226   : > { %v710_v7 = vpop.f32.mrf.mxu1  ;;  %v855_v55 = vpop.f32.mrf.mxu2 }
 0x227   : > { %v711_v35 = vadd.f32 %v710_v7, %v2895_v62  ;;  %v856_v62 = vadd.f32 %v2987_v43, %v855_v55  ;;  %v848_v7 = vadd.f32 %v2987_v43, %v847_v9  ;;  %v843_v55 = vadd.f32 %v2987_v43, %v842_v5 }
 0x228   : > { %v836_v9 = vadd.f32 %v2987_v43, %v2965_v57  ;;  %v910_v5 = vmax.f32 %v838_v61, 0.0  ;;  %v826_v57 = vadd.f32 %v2987_v43, %v2951_v23 }
 0x229   : > { %v917_v17 = vmax.f32 %v856_v62, 0.0 }
 0x22e   : > { %v712_v6 = vpop.f32.mrf.mxu1  ;;  %v857_v31 = vpop.f32.mrf.mxu2 }
 0x22f   : > { %v713_v3 = vadd.f32 %v712_v6, %v2898_v2  ;;  %v858_v15 = vadd.f32 %v2987_v43, %v857_v31  ;;  %v916_v6 = vmax.f32 %v853_v40, 0.0  ;;  %v846_v31 = vadd.f32 %v2987_v43, %v845_v53 }
 0x230   : > { %v833_v53 = vadd.f32 %v2987_v43, %v2960_v46  ;;  %v906_v46 = vmax.f32 %v828_v47, 0.0 }
 0x231   : > { %v730_v28 = vpack.c.bf16 %v713_v3, %v711_v35  ;;  %v918_v54 = vmax.f32 %v858_v15, 0.0  ;;  %v915_v3 = vmax.f32 %v851_v12, 0.0 }
 0x232   : > { %v908_v40 = vmax.f32 %v833_v53, 0.0 }
 0x233   : > { %2316 = vmatmul.msk.bf16.gmra.mxu3 %vm767_vm0, %v730_v28  ;;  %v943_v35 = vpack.c.bf16 %v918_v54, %v917_v17  ;;  %v914_v28 = vmax.f32 %v848_v7, 0.0  ;;  %v905_v17 = vmax.f32 %v826_v57, 0.0 }
 0x235   : > { %v937_v49 = vpack.c.bf16 %v906_v46, %v905_v17 }
 0x236   : > { %v860_v37 = vpop.f32.mrf.mxu2 }
 0x237   : > { %v861_v50 = vadd.f32 %v2987_v43, %v860_v37  ;;  %v942_v37 = vpack.c.bf16 %v916_v6, %v915_v3 }
 0x239   : > { %v919_v44 = vmax.f32 %v861_v50, 0.0  ;;  %v913_v50 = vmax.f32 %v846_v31, 0.0 }
 0x23b   : > { %v941_v15 = vpack.c.bf16 %v914_v28, %v913_v50 }
 0x23e   : > { %v862_v18 = vpop.f32.mrf.mxu2 }
 0x23f   : > { %v863_v32 = vadd.f32 %v2987_v43, %v862_v18  ;;  %v912_v18 = vmax.f32 %v843_v55, 0.0 }
 0x241   : > { %v920_v2 = vmax.f32 %v863_v32, 0.0  ;;  %v911_v32 = vmax.f32 %v841_v21, 0.0 }
 0x243   : > { %v944_v26 = vpack.c.bf16 %v920_v2, %v919_v44  ;;  %v940_v62 = vpack.c.bf16 %v912_v18, %v911_v32  ;;  %v909_v44 = vmax.f32 %v836_v9, 0.0 }
 0x245   : > { %953 = vmatpush.bf16.msrb.mxu3 %v944_v26  ;;  %v939_v54 = vpack.c.bf16 %v910_v5, %v909_v44  ;;  %v907_v26 = vmax.f32 %v831_v1, 0.0 }
 0x246   : > { %v865_v17 = vpop.f32.mrf.mxu2 }
 0x247   : > { %v938_v12 = vpack.c.bf16 %v908_v40, %v907_v26 }
 0x249   : > { %954 = vmatpush.bf16.msrb.mxu3 %v943_v35 }
 0x24d   : > { %955 = vmatpush.bf16.msrb.mxu3 %v942_v37 }
 0x251   : > { %956 = vmatpush.bf16.msrb.mxu3 %v941_v15 }
 0x255   : > { %957 = vmatpush.bf16.msrb.mxu3 %v940_v62 }
 0x256   : > { %v3007_v2 = vpop.f32.mrf.mxu3 }
 0x259   : > { %958 = vmatpush.bf16.msrb.mxu3 %v939_v54 }
 0x25d   : > { %959 = vmatpush.bf16.msrb.mxu3 %v938_v12 }
 0x25e   : > { %v872_v7 = vpop.f32.mrf.mxu3 }
 0x261   : > { %960 = vmatpush.bf16.msrb.mxu3 %v937_v49 }
 0x264   : > { %961 = vmatmul.bf16.vlgmr.msrb.gmra.mxu3 %v2772_v39 }
 0x266   : > { %v875_v6 = vpop.f32.mrf.mxu3 }
 0x26e   : > { %v877_v35 = vpop.f32.mrf.mxu3 }
 0x274   : > { %966 = vmatmul.bf16.gmra.mxu3 %v2782_v45 }
 0x276   : > { %v880_v63 = vpop.f32.mrf.mxu3 }
 0x27e   : > { %v882_v31 = vpop.f32.mrf.mxu3 }
 0x27f   : > { %v883_v49 = vadd.f32 %v2987_v43, %v882_v31 }
 0x284   : > { %971 = vmatmul.bf16.gmra.mxu3 %v2794_v52 }
 0x286   : > { %v885_v23 = vpop.f32.mrf.mxu3 }
 0x287   : > { %v886_v46 = vadd.f32 %v2987_v43, %v885_v23  ;;  %v873_v23 = vadd.f32 %v2987_v43, %v872_v7 }
 0x28e   : > { %v887_v3 = vpop.f32.mrf.mxu3 }
 0x28f   : > { %v888_v54 = vadd.f32 %v2987_v43, %v887_v3  ;;  %v876_v3 = vadd.f32 %v2987_v43, %v875_v6  ;;  %v866_v6 = vadd.f32 %v2987_v43, %v865_v17 }
 0x291   : > { %v925_v31 = vmax.f32 %v876_v3, 0.0 }
 0x294   : > { %976 = vmatmul.bf16.gmra.mxu3 %v2808_v60 }
 0x296   : > { %v890_v55 = vpop.f32.mrf.mxu3 }
 0x297   : > { %v891_v47 = vadd.f32 %v2987_v43, %v890_v55  ;;  %v878_v55 = vadd.f32 %v2987_v43, %v877_v35 }
 0x299   : > { %v931_v12 = vmax.f32 %v891_v47, 0.0  ;;  %v921_v47 = vmax.f32 %v866_v6, 0.0 }
 0x29e   : > { %v892_v28 = vpop.f32.mrf.mxu3 }
 0x29f   : > { %v893_v62 = vadd.f32 %v2987_v43, %v892_v28  ;;  %v930_v28 = vmax.f32 %v888_v54, 0.0 }
 0x2a1   : > { %v932_v57 = vmax.f32 %v893_v62, 0.0 }
 0x2a4   : > { %981 = vmatmul.bf16.gmra.mxu3 %v2822_v4 }
 0x2a6   : > { %v895_v37 = vpop.f32.mrf.mxu3 }
 0x2a7   : > { %v896_v32 = vadd.f32 %v2987_v43, %v895_v37  ;;  %v950_v37 = vpack.c.bf16 %v932_v57, %v931_v12  ;;  %v2501_v57 = vld [vmem:[%s3409_s2 + $0x30] sm:$0xff]  ;;  %v2499_v12 = vld [vmem:[%s3409_s2 + $0x20] sm:$0xff] }
 0x2a9   : > { %v933_v40 = vmax.f32 %v896_v32, 0.0 }
 0x2ae   : > { %v897_v21 = vpop.f32.mrf.mxu3 }
 0x2af   : > { %v898_v15 = vadd.f32 %v2987_v43, %v897_v21  ;;  %v881_v21 = vadd.f32 %v2987_v43, %v880_v63  ;;  %v871_v63 = vadd.f32 %v2987_v43, %v3007_v2  ;;  %v2502_v2 = vld [vmem:[%s3409_s2 + $0x38] sm:$0xff] }
 0x2b0   : > { %1237 = vmatpush.bf16.msrb.mxu0 %v2502_v2 }
 0x2b1   : > { %v934_v1 = vmax.f32 %v898_v15, 0.0  ;;  %v927_v15 = vmax.f32 %v881_v21, 0.0 }
 0x2b3   : > { %v951_v26 = vpack.c.bf16 %v934_v1, %v933_v40  ;;  %v923_v1 = vmax.f32 %v871_v63, 0.0 }
 0x2b4   : > { %986 = vmatmul.bf16.gmra.mxu3 %v2836_v14  ;;  %1238 = vmatpush.bf16.msrb.mxu0 %v2501_v57 }
 0x2b6   : > { %v900_v50 = vpop.f32.mrf.mxu3 }
 0x2b7   : > { %v901_v61 = vadd.f32 %v2987_v43, %v900_v50  ;;  %v929_v50 = vmax.f32 %v886_v46, 0.0 }
 0x2b9   : > { %v935_v53 = vmax.f32 %v901_v61, 0.0  ;;  %v928_v61 = vmax.f32 %v883_v49, 0.0 }
 0x2bb   : > { %v948_v32 = vpack.c.bf16 %v928_v61, %v927_v15 }
 0x2be   : > { %v902_v18 = vpop.f32.mrf.mxu3 }
 0x2bf   : > { %v903_v9 = vadd.f32 %v2987_v43, %v902_v18  ;;  %v949_v18 = vpack.c.bf16 %v930_v28, %v929_v50 }
 0x2c1   : > { %v936_v5 = vmax.f32 %v903_v9, 0.0  ;;  %v926_v9 = vmax.f32 %v878_v55, 0.0 }
 0x2c3   : > { %v952_v44 = vpack.c.bf16 %v936_v5, %v935_v53  ;;  %v867_v53 = vpop.f32.mrf.mxu2  ;;  %v924_v5 = vmax.f32 %v873_v23, 0.0  ;;  %v947_v62 = vpack.c.bf16 %v926_v9, %v925_v31 }
 0x2c4   : > { %991 = vmatmul.bf16.gmra.mxu3 %v2850_v25  ;;  %v868_v35 = vadd.f32 %v2987_v43, %v867_v53 }
 0x2c5   : > { %1042 = vmatpush.bf16.msrb.mxu2 %v952_v44  ;;  %v946_v7 = vpack.c.bf16 %v924_v5, %v923_v1 }
 0x2c6   : > { %v922_v44 = vmax.f32 %v868_v35, 0.0 }
 0x2c8   : > { %v945_v40 = vpack.c.bf16 %v922_v44, %v921_v47 }
 0x2c9   : > { %1043 = vmatpush.bf16.msrb.mxu2 %v951_v26  ;;  %v2500_v26 = vld [vmem:[%s3409_s2 + $0x28] sm:$0xff] }
 0x2ca   : > { %1239 = vmatpush.bf16.msrb.mxu0 %v2500_v26 }
 0x2cd   : > { %1044 = vmatpush.bf16.msrb.mxu2 %v950_v37 }
 0x2ce   : > { %1240 = vmatpush.bf16.msrb.mxu0 %v2499_v12 }
 0x2d1   : > { %1045 = vmatpush.bf16.msrb.mxu2 %v949_v18 }
 0x2d4   : > { %996 = vmatmul.bf16.gmra.mxu3 %v2864_v34 }
 0x2d5   : > { %1046 = vmatpush.bf16.msrb.mxu2 %v948_v32 }
 0x2d9   : > { %1047 = vmatpush.bf16.msrb.mxu2 %v947_v62 }
 0x2dd   : > { %1048 = vmatpush.bf16.msrb.mxu2 %v946_v7 }
 0x2e1   : > { %1049 = vmatpush.bf16.msrb.mxu2 %v945_v40 }
 0x2e4   : > { %1050 = vmatmul.bf16.vlgmr.msrb.gmra.mxu2 %v2788_v48  ;;  %1001 = vmatmul.bf16.gmra.mxu3 %v2730_v10 }
 0x2e7   : > { %v962_v43 = vpop.f32.mrf.mxu3 }
 0x2ef   : > { %v964_v54 = vpop.f32.mrf.mxu3 }
 0x2f4   : > { %1055 = vmatmul.bf16.gmra.mxu2 %v2802_v56  ;;  %1006 = vmatmul.bf16.gmra.mxu3 %v2735_v13 }
 0x2f7   : > { %v967_v46 = vpop.f32.mrf.mxu3 }
 0x2ff   : > { %v969_v17 = vpop.f32.mrf.mxu3 }
 0x304   : > { %1060 = vmatmul.bf16.gmra.mxu2 %v2816_v0  ;;  %1011 = vmatmul.bf16.gmra.mxu3 %v2740_v16 }
 0x307   : > { %v972_v49 = vpop.f32.mrf.mxu3 }
 0x30f   : > { %v974_v28 = vpop.f32.mrf.mxu3 }
 0x314   : > { %1065 = vmatmul.bf16.gmra.mxu2 %v2830_v8  ;;  %1016 = vmatmul.bf16.gmra.mxu3 %v2745_v19 }
 0x317   : > { %v977_v21 = vpop.f32.mrf.mxu3 }
 0x31f   : > { %v979_v3 = vpop.f32.mrf.mxu3 }
 0x324   : > { %1070 = vmatmul.bf16.gmra.mxu2 %v2844_v20  ;;  %1021 = vmatmul.bf16.gmra.mxu3 %v2750_v22 }
 0x327   : > { %v982_v23 = vpop.f32.mrf.mxu3 }
 0x32f   : > { %v984_v31 = vpop.f32.mrf.mxu3 }
 0x334   : > { %1075 = vmatmul.bf16.gmra.mxu2 %v2858_v30  ;;  %1026 = vmatmul.bf16.gmra.mxu3 %v2759_v29 }
 0x337   : > { %v987_v5 = vpop.f32.mrf.mxu3 }
 0x33f   : > { %v989_v47 = vpop.f32.mrf.mxu3 }
 0x344   : > { %1080 = vmatmul.bf16.gmra.mxu2 %v2875_v41  ;;  %1031 = vmatmul.bf16.gmra.mxu3 %v2768_v36 }
 0x354   : > { %1085 = vmatmul.bf16.gmra.mxu2 %v2893_v59  ;;  %1036 = vmatmul.bf16.gmra.mxu3 %v2778_v42 }
 0x364   : > { %1090 = vmatmul.bf16.gmra.mxu2 %v2902_v11 }
 0x367   : > { %v1051_v37 = vpop.f32.mrf.mxu2 }
 0x368   : > { %v1052_v55 = vadd.f32 %v1051_v37, %v962_v43  ;;  %v3417_v37 = vld [vmem:[#allocation5_spill] sm:$0xff] }
 0x36f   : > { %v1053_v50 = vpop.f32.mrf.mxu2 }
 0x370   : > { %v1054_v61 = vadd.f32 %v1053_v50, %v964_v54  ;;  %v992_v54 = vpop.f32.mrf.mxu3 }
 0x372   : > { %v1131_v18 = vpack.c.bf16 %v1054_v61, %v1052_v55 }
 0x374   : > { %1095 = vmatmul.bf16.gmra.mxu2 %v2908_v33  ;;  %2342 = vmatmul.msk.bf16.vlgmr.msrb.gmra.mxu0 %vm767_vm0, %v1131_v18 }
 0x377   : > { %v1056_v15 = vpop.f32.mrf.mxu2 }
 0x378   : > { %v1057_v32 = vadd.f32 %v1056_v15, %v967_v46  ;;  %v994_v46 = vpop.f32.mrf.mxu3 }
 0x37f   : > { %v1058_v9 = vpop.f32.mrf.mxu2 }
 0x380   : > { %v1059_v53 = vadd.f32 %v1058_v9, %v969_v17  ;;  %v997_v50 = vpop.f32.mrf.mxu3 }
 0x382   : > { %v1132_v63 = vpack.c.bf16 %v1059_v53, %v1057_v32 }
 0x384   : > { %1100 = vmatmul.bf16.gmra.mxu2 %v2914_v58  ;;  %2343 = vmatmul.msk.bf16.gmra.mxu0 %vm767_vm0, %v1132_v63 }
 0x387   : > { %v1061_v35 = vpop.f32.mrf.mxu2 }
 0x388   : > { %v1062_v6 = vadd.f32 %v1061_v35, %v972_v49  ;;  %v999_v61 = vpop.f32.mrf.mxu3 }
 0x38f   : > { %v1063_v62 = vpop.f32.mrf.mxu2 }
 0x390   : > { %v1064_v1 = vadd.f32 %v1063_v62, %v974_v28  ;;  %v1002_v32 = vpop.f32.mrf.mxu3 }
 0x392   : > { %v1133_v44 = vpack.c.bf16 %v1064_v1, %v1062_v6 }
 0x394   : > { %1105 = vmatmul.bf16.gmra.mxu2 %v2920_v27  ;;  %2344 = vmatmul.msk.bf16.gmra.mxu0 %vm767_vm0, %v1133_v44 }
 0x397   : > { %v1066_v7 = vpop.f32.mrf.mxu2 }
 0x398   : > { %v1067_v43 = vadd.f32 %v1066_v7, %v977_v21  ;;  %v1004_v35 = vpop.f32.mrf.mxu3 }
 0x39f   : > { %v1068_v40 = vpop.f32.mrf.mxu2 }
 0x3a0   : > { %v1069_v2 = vadd.f32 %v1068_v40, %v979_v3  ;;  %v1007_v6 = vpop.f32.mrf.mxu3 }
 0x3a2   : > { %v1134_v57 = vpack.c.bf16 %v1069_v2, %v1067_v43 }
 0x3a4   : > { %1110 = vmatmul.bf16.gmra.mxu2 %v2926_v51  ;;  %2345 = vmatmul.msk.bf16.gmra.mxu0 %vm767_vm0, %v1134_v57 }
 0x3a7   : > { %v1071_v26 = vpop.f32.mrf.mxu2 }
 0x3a8   : > { %v1072_v17 = vadd.f32 %v1071_v26, %v982_v23  ;;  %v1009_v40 = vpop.f32.mrf.mxu3 }
 0x3af   : > { %v1073_v12 = vpop.f32.mrf.mxu2 }
 0x3b0   : > { %v1074_v49 = vadd.f32 %v1073_v12, %v984_v31  ;;  %v1012_v26 = vpop.f32.mrf.mxu3  ;;  %v3085_v12 = vld [vmem:[%s3410_s3 + $0x1] ss:$0 sm:$0xff] }
 0x3b2   : > { %v1135_v28 = vpack.c.bf16 %v1074_v49, %v1072_v17 }
 0x3b4   : > { %1115 = vmatmul.bf16.gmra.mxu2 %v3417_v37  ;;  %2346 = vmatmul.msk.bf16.gmra.mxu0 %vm767_vm0, %v1135_v28 }
 0x3b7   : > { %v1076_v55 = vpop.f32.mrf.mxu2 }
 0x3b8   : > { %v1077_v18 = vadd.f32 %v1076_v55, %v987_v5  ;;  %v1014_v55 = vpop.f32.mrf.mxu3 }
 0x3bf   : > { %v1078_v21 = vpop.f32.mrf.mxu2 }
 0x3c0   : > { %v1079_v3 = vadd.f32 %v1078_v21, %v989_v47 }
 0x3c2   : > { %v1136_v15 = vpack.c.bf16 %v1079_v3, %v1077_v18 }
 0x3c4   : > { %1120 = vmatmul.bf16.gmra.mxu2 %v2938_v38  ;;  %2347 = vmatmul.msk.bf16.gmra.mxu0 %vm767_vm0, %v1136_v15 }
 0x3c7   : > { %v1081_v9 = vpop.f32.mrf.mxu2 }
 0x3c8   : > { %v1082_v53 = vadd.f32 %v1081_v9, %v992_v54 }
 0x3cf   : > { %v1083_v23 = vpop.f32.mrf.mxu2 }
 0x3d0   : > { %v1084_v63 = vadd.f32 %v1083_v23, %v994_v46 }
 0x3d2   : > { %v1137_v31 = vpack.c.bf16 %v1084_v63, %v1082_v53  ;;  %v1017_v53 = vpop.f32.mrf.mxu3 }
 0x3d4   : > { %1125 = vmatmul.bf16.gmra.mxu2 %v2944_v24  ;;  %2348 = vmatmul.msk.bf16.gmra.mxu0 %vm767_vm0, %v1137_v31 }
 0x3d7   : > { %v1086_v62 = vpop.f32.mrf.mxu2 }
 0x3d8   : > { %v1087_v1 = vadd.f32 %v1086_v62, %v997_v50 }
 0x3df   : > { %v1088_v5 = vpop.f32.mrf.mxu2 }
 0x3e0   : > { %v1089_v44 = vadd.f32 %v1088_v5, %v999_v61 }
 0x3e2   : > { %v1138_v7 = vpack.c.bf16 %v1089_v44, %v1087_v1 }
 0x3e4   : > { %2349 = vmatmul.msk.bf16.gmra.mxu0 %vm767_vm0, %v1138_v7 }
 0x3e7   : > { %v1091_v47 = vpop.f32.mrf.mxu2 }
 0x3e8   : > { %v1092_v2 = vadd.f32 %v1091_v47, %v1002_v32  ;;  %v1019_v47 = vpop.f32.mrf.mxu3 }
 0x3ef   : > { %v1093_v43 = vpop.f32.mrf.mxu2 }
 0x3f0   : > { %v1094_v54 = vadd.f32 %v1093_v43, %v1004_v35 }
 0x3f1   : > { %v1242_v57 = vpop.f32.mrf.mxu0 }
 0x3f2   : > { %v1139_v46 = vpack.c.bf16 %v1094_v54, %v1092_v2  ;;  %v1243_v49 = vadd.f32 %v3085_v12, %v1242_v57 }
 0x3f4   : > { %2350 = vmatmul.msk.bf16.gmra.mxu0 %vm767_vm0, %v1139_v46  ;;  %v1322_v21 = vmax.f32 %v1243_v49, 0.0 }
 0x3f7   : > { %v1096_v17 = vpop.f32.mrf.mxu2 }
 0x3f8   : > { %v1097_v15 = vadd.f32 %v1096_v17, %v1007_v6  ;;  %v1022_v17 = vpop.f32.mrf.mxu3 }
 0x3f9   : > { %v1244_v28 = vpop.f32.mrf.mxu0 }
 0x3fa   : > { %v1245_v50 = vadd.f32 %v3085_v12, %v1244_v28 }
 0x3fc   : > { %v1323_v61 = vmax.f32 %v1245_v50, 0.0 }
 0x3fe   : > { %v3090_v18 = vpack.c.bf16 %v1323_v61, %v1322_v21 }
 0x3ff   : > { %v1098_v3 = vpop.f32.mrf.mxu2 }
 0x400   : > { %v1099_v9 = vadd.f32 %v1098_v3, %v1009_v40 }
 0x401   : > { %v1247_v32 = vpop.f32.mrf.mxu0 }
 0x402   : > { %v1140_v23 = vpack.c.bf16 %v1099_v9, %v1097_v15  ;;  %v1248_v31 = vadd.f32 %v3085_v12, %v1247_v32  ;;  %v1024_v9 = vpop.f32.mrf.mxu3 }
 0x404   : > { %2351 = vmatmul.msk.bf16.gmra.mxu0 %vm767_vm0, %v1140_v23  ;;  %v1324_v5 = vmax.f32 %v1248_v31, 0.0 }
 0x407   : > { %v1101_v63 = vpop.f32.mrf.mxu2 }
 0x408   : > { %v1102_v43 = vadd.f32 %v1101_v63, %v1012_v26 }
 0x409   : > { %v1249_v35 = vpop.f32.mrf.mxu0 }
 0x40a   : > { %v1250_v62 = vadd.f32 %v3085_v12, %v1249_v35 }
 0x40c   : > { %v1325_v1 = vmax.f32 %v1250_v62, 0.0 }
 0x40e   : > { %v3095_v44 = vpack.c.bf16 %v1325_v1, %v1324_v5  ;;  %v1027_v5 = vpop.f32.mrf.mxu3 }
 0x40f   : > { %v1103_v7 = vpop.f32.mrf.mxu2 }
 0x410   : > { %v1104_v6 = vadd.f32 %v1103_v7, %v1014_v55 }
 0x411   : > { %v1252_v40 = vpop.f32.mrf.mxu0 }
 0x412   : > { %v1141_v2 = vpack.c.bf16 %v1104_v6, %v1102_v43  ;;  %v1253_v57 = vadd.f32 %v3085_v12, %v1252_v40 }
 0x414   : > { %2352 = vmatmul.msk.bf16.gmra.mxu0 %vm767_vm0, %v1141_v2  ;;  %v1326_v28 = vmax.f32 %v1253_v57, 0.0 }
 0x416   : > { %v1029_v40 = vpop.f32.mrf.mxu3 }
 0x417   : > { %v1106_v54 = vpop.f32.mrf.mxu2 }
 0x418   : > { %v1107_v3 = vadd.f32 %v1106_v54, %v1017_v53 }
 0x419   : > { %v1254_v46 = vpop.f32.mrf.mxu0 }
 0x41a   : > { %v1255_v49 = vadd.f32 %v3085_v12, %v1254_v46 }
 0x41c   : > { %v1327_v50 = vmax.f32 %v1255_v49, 0.0 }
 0x41e   : > { %v3100_v21 = vpack.c.bf16 %v1327_v50, %v1326_v28  ;;  %v1032_v28 = vpop.f32.mrf.mxu3 }
 0x41f   : > { %v1108_v61 = vpop.f32.mrf.mxu2 }
 0x420   : > { %v1109_v15 = vadd.f32 %v1108_v61, %v1019_v47 }
 0x421   : > { %v1257_v26 = vpop.f32.mrf.mxu0 }
 0x422   : > { %v1142_v55 = vpack.c.bf16 %v1109_v15, %v1107_v3  ;;  %v1258_v23 = vadd.f32 %v3085_v12, %v1257_v26 }
 0x424   : > { %2353 = vmatmul.msk.bf16.gmra.mxu0 %vm767_vm0, %v1142_v55  ;;  %v1328_v35 = vmax.f32 %v1258_v23, 0.0 }
 0x426   : > { %v1034_v26 = vpop.f32.mrf.mxu3 }
 0x427   : > { %v1111_v32 = vpop.f32.mrf.mxu2 }
 0x428   : > { %v1112_v43 = vadd.f32 %v1111_v32, %v1022_v17 }
 0x429   : > { %v1259_v63 = vpop.f32.mrf.mxu0 }
 0x42a   : > { %v1260_v31 = vadd.f32 %v3085_v12, %v1259_v63 }
 0x42c   : > { %v1329_v62 = vmax.f32 %v1260_v31, 0.0 }
 0x42e   : > { %v1357_v1 = vpack.c.bf16 %v1329_v62, %v1328_v35  ;;  %v1037_v63 = vpop.f32.mrf.mxu3 }
 0x42f   : > { %v1113_v7 = vpop.f32.mrf.mxu2 }
 0x430   : > { %v1114_v6 = vadd.f32 %v1113_v7, %v1024_v9 }
 0x431   : > { %v1262_v53 = vpop.f32.mrf.mxu0 }
 0x432   : > { %v1143_v47 = vpack.c.bf16 %v1114_v6, %v1112_v43 }
 0x434   : > { %2354 = vmatmul.msk.bf16.gmra.mxu0 %vm767_vm0, %v1143_v47 }
 0x436   : > { %v1039_v62 = vpop.f32.mrf.mxu3 }
 0x437   : > { %v1116_v2 = vpop.f32.mrf.mxu2 }
 0x438   : > { %v1117_v46 = vadd.f32 %v1116_v2, %v1027_v5 }
 0x439   : > { %v1264_v54 = vpop.f32.mrf.mxu0 }
 0x43f   : > { %v1118_v57 = vpop.f32.mrf.mxu2 }
 0x440   : > { %v1119_v49 = vadd.f32 %v1118_v57, %v1029_v40 }
 0x441   : > { %v1267_v50 = vpop.f32.mrf.mxu0 }
 0x442   : > { %v1144_v61 = vpack.c.bf16 %v1119_v49, %v1117_v46 }
 0x444   : > { %2355 = vmatmul.msk.bf16.gmra.mxu0 %vm767_vm0, %v1144_v61 }
 0x447   : > { %v1121_v3 = vpop.f32.mrf.mxu2 }
 0x448   : > { %v1122_v55 = vadd.f32 %v1121_v3, %v1032_v28 }
 0x449   : > { %v1269_v15 = vpop.f32.mrf.mxu0 }
 0x44a   : > { %v1270_v3 = vadd.f32 %v3085_v12, %v1269_v15 }
 0x44f   : > { %v1123_v17 = vpop.f32.mrf.mxu2 }
 0x450   : > { %v1124_v9 = vadd.f32 %v1123_v17, %v1034_v26 }
 0x451   : > { %v1272_v32 = vpop.f32.mrf.mxu0 }
 0x452   : > { %v1145_v23 = vpack.c.bf16 %v1124_v9, %v1122_v55  ;;  %v1273_v49 = vadd.f32 %v3085_v12, %v1272_v32  ;;  %v1268_v55 = vadd.f32 %v3085_v12, %v1267_v50 }
 0x454   : > { %2356 = vmatmul.msk.bf16.gmra.mxu0 %vm767_vm0, %v1145_v23  ;;  %v1334_v9 = vmax.f32 %v1273_v49, 0.0 }
 0x457   : > { %v1126_v31 = vpop.f32.mrf.mxu2 }
 0x458   : > { %v1127_v7 = vadd.f32 %v1126_v31, %v1037_v63  ;;  %v1265_v63 = vadd.f32 %v3085_v12, %v1264_v54  ;;  %v1333_v31 = vmax.f32 %v1270_v3, 0.0 }
 0x459   : > { %v1274_v35 = vpop.f32.mrf.mxu0 }
 0x45a   : > { %v1275_v57 = vadd.f32 %v3085_v12, %v1274_v35  ;;  %v1331_v32 = vmax.f32 %v1265_v63, 0.0 }
 0x45c   : > { %v1335_v26 = vmax.f32 %v1275_v57, 0.0 }
 0x45e   : > { %v1360_v35 = vpack.c.bf16 %v1335_v26, %v1334_v9 }
 0x45f   : > { %v1128_v5 = vpop.f32.mrf.mxu2 }
 0x460   : > { %v1129_v43 = vadd.f32 %v1128_v5, %v1039_v62  ;;  %v1263_v62 = vadd.f32 %v3085_v12, %v1262_v53  ;;  %v1332_v5 = vmax.f32 %v1268_v55, 0.0  ;;  %v2505_v55 = vld [vmem:[%s3409_s2 + $0x50] sm:$0xff] }
 0x461   : > { %v1277_v6 = vpop.f32.mrf.mxu0 }
 0x462   : > { %v1146_v47 = vpack.c.bf16 %v1129_v43, %v1127_v7  ;;  %v1278_v40 = vadd.f32 %v3085_v12, %v1277_v6  ;;  %v1359_v7 = vpack.c.bf16 %v1333_v31, %v1332_v5  ;;  %v1330_v43 = vmax.f32 %v1263_v62, 0.0 }
 0x464   : > { %2357 = vmatmul.msk.bf16.gmra.mxu0 %vm767_vm0, %v1146_v47  ;;  %v1336_v28 = vmax.f32 %v1278_v40, 0.0  ;;  %v1358_v6 = vpack.c.bf16 %v1331_v32, %v1330_v43 }
 0x469   : > { %v1279_v2 = vpop.f32.mrf.mxu0 }
 0x46a   : > { %v1280_v46 = vadd.f32 %v3085_v12, %v1279_v2 }
 0x46c   : > { %v1337_v61 = vmax.f32 %v1280_v46, 0.0 }
 0x46e   : > { %v1361_v17 = vpack.c.bf16 %v1337_v61, %v1336_v28 }
 0x470   : > { %1370 = vmatpush.bf16.msra.mxu1 %v1361_v17 }
 0x471   : > { %v3115_v23 = vpop.f32.mrf.mxu0 }
 0x474   : > { %1371 = vmatpush.bf16.msra.mxu1 %v1360_v35 }
 0x478   : > { %1372 = vmatpush.bf16.msra.mxu1 %v1359_v7 }
 0x479   : > { %v3119_v15 = vpop.f32.mrf.mxu0 }
 0x47c   : > { %1373 = vmatpush.bf16.msra.mxu1 %v1358_v6 }
 0x480   : > { %1374 = vmatpush.bf16.msra.mxu1 %v1357_v1 }
 0x481   : > { %v1287_v50 = vpop.f32.mrf.mxu0 }
 0x484   : > { %1375 = vmatpush.bf16.msra.mxu1 %v3100_v21 }
 0x488   : > { %1376 = vmatpush.bf16.msra.mxu1 %v3095_v44 }
 0x489   : > { %v1289_v54 = vpop.f32.mrf.mxu0 }
 0x48c   : > { %1377 = vmatpush.bf16.msra.mxu1 %v3090_v18 }
 0x48f   : > { %1378 = vmatmul.bf16.vlgmr.msra.gmra.mxu1 %v2772_v39 }
 0x491   : > { %v1292_v53 = vpop.f32.mrf.mxu0 }
 0x499   : > { %v1294_v47 = vpop.f32.mrf.mxu0 }
 0x49f   : > { %1383 = vmatmul.bf16.gmra.mxu1 %v2782_v45 }
 0x4a1   : > { %v1297_v40 = vpop.f32.mrf.mxu0 }
 0x4a9   : > { %v1299_v2 = vpop.f32.mrf.mxu0 }
 0x4aa   : > { %v1300_v7 = vadd.f32 %v3085_v12, %v1299_v2  ;;  %v1288_v2 = vadd.f32 %v3085_v12, %v1287_v50 }
 0x4af   : > { %1388 = vmatmul.bf16.gmra.mxu1 %v2794_v52 }
 0x4b1   : > { %v1302_v57 = vpop.f32.mrf.mxu0 }
 0x4b2   : > { %v1303_v5 = vadd.f32 %v3085_v12, %v1302_v57  ;;  %v1290_v57 = vadd.f32 %v3085_v12, %v1289_v54 }
 0x4b9   : > { %v1304_v1 = vpop.f32.mrf.mxu0 }
 0x4ba   : > { %v1305_v31 = vadd.f32 %v3085_v12, %v1304_v1  ;;  %v1293_v1 = vadd.f32 %v3085_v12, %v1292_v53  ;;  %v1283_v53 = vadd.f32 %v3085_v12, %v3115_v23 }
 0x4bc   : > { %v1347_v43 = vmax.f32 %v1305_v31, 0.0 }
 0x4bf   : > { %1393 = vmatmul.bf16.gmra.mxu1 %v2808_v60 }
 0x4c1   : > { %v1307_v21 = vpop.f32.mrf.mxu0 }
 0x4c2   : > { %v1308_v9 = vadd.f32 %v3085_v12, %v1307_v21  ;;  %v1295_v21 = vadd.f32 %v3085_v12, %v1294_v47  ;;  %v1341_v47 = vmax.f32 %v1290_v57, 0.0  ;;  %v2507_v57 = vld [vmem:[%s3409_s2 + $0x60] sm:$0xff] }
 0x4c4   : > { %v1348_v32 = vmax.f32 %v1308_v9, 0.0 }
 0x4c9   : > { %v1309_v46 = vpop.f32.mrf.mxu0 }
 0x4ca   : > { %v1310_v26 = vadd.f32 %v3085_v12, %v1309_v46  ;;  %v1298_v46 = vadd.f32 %v3085_v12, %v1297_v40  ;;  %v1285_v40 = vadd.f32 %v3085_v12, %v3119_v15 }
 0x4cc   : > { %v1349_v35 = vmax.f32 %v1310_v26, 0.0 }
 0x4ce   : > { %v1367_v6 = vpack.c.bf16 %v1349_v35, %v1348_v32 }
 0x4cf   : > { %1398 = vmatmul.bf16.gmra.mxu1 %v2822_v4  ;;  %v2506_v4 = vld [vmem:[%s3409_s2 + $0x58] sm:$0xff] }
 0x4d0   : > { %1654 = vmatpush.bf16.msra.mxu2 %v2506_v4 }
 0x4d1   : > { %v1312_v44 = vpop.f32.mrf.mxu0 }
 0x4d2   : > { %v1313_v61 = vadd.f32 %v3085_v12, %v1312_v44  ;;  %v1345_v44 = vmax.f32 %v1300_v7, 0.0 }
 0x4d4   : > { %v1350_v63 = vmax.f32 %v1313_v61, 0.0  ;;  %1655 = vmatpush.bf16.msra.mxu2 %v2505_v55  ;;  %v1340_v61 = vmax.f32 %v1288_v2, 0.0 }
 0x4d6   : > { %v1363_v54 = vpack.c.bf16 %v1341_v47, %v1340_v61 }
 0x4d9   : > { %v1314_v18 = vpop.f32.mrf.mxu0 }
 0x4da   : > { %v1315_v28 = vadd.f32 %v3085_v12, %v1314_v18 }
 0x4dc   : > { %v1351_v17 = vmax.f32 %v1315_v28, 0.0  ;;  %v1342_v28 = vmax.f32 %v1293_v1, 0.0 }
 0x4de   : > { %v1368_v62 = vpack.c.bf16 %v1351_v17, %v1350_v63 }
 0x4df   : > { %1403 = vmatmul.bf16.gmra.mxu1 %v2836_v14 }
 0x4e1   : > { %v1317_v39 = vpop.f32.mrf.mxu0 }
 0x4e2   : > { %v1318_v49 = vadd.f32 %v3085_v12, %v1317_v39  ;;  %v1344_v39 = vmax.f32 %v1298_v46, 0.0 }
 0x4e4   : > { %v1352_v3 = vmax.f32 %v1318_v49, 0.0  ;;  %v1343_v49 = vmax.f32 %v1295_v21, 0.0 }
 0x4e9   : > { %v1319_v45 = vpop.f32.mrf.mxu0 }
 0x4ea   : > { %v1320_v52 = vadd.f32 %v3085_v12, %v1319_v45  ;;  %v1365_v45 = vpack.c.bf16 %v1345_v44, %v1344_v39  ;;  %v2510_v12 = vld [vmem:[%s3409_s2 + $0x78] sm:$0xff] }
 0x4eb   : > { %1877 = vmatpush.bf16.msra.mxu0 %v2510_v12 }
 0x4ec   : > { %v1353_v60 = vmax.f32 %v1320_v52, 0.0  ;;  %v1364_v52 = vpack.c.bf16 %v1343_v49, %v1342_v28 }
 0x4ee   : > { %v1369_v14 = vpack.c.bf16 %v1353_v60, %v1352_v3  ;;  %v1339_v3 = vmax.f32 %v1285_v40, 0.0  ;;  %v1338_v60 = vmax.f32 %v1283_v53, 0.0 }
 0x4ef   : > { %1408 = vmatmul.bf16.gmra.mxu1 %v2850_v25  ;;  %v1346_v25 = vmax.f32 %v1303_v5, 0.0 }
 0x4f0   : > { %1459 = vmatpush.bf16.msra.mxu3 %v1369_v14  ;;  %v1362_v4 = vpack.c.bf16 %v1339_v3, %v1338_v60 }
 0x4f1   : > { %v1366_v18 = vpack.c.bf16 %v1347_v43, %v1346_v25 }
 0x4f4   : > { %1460 = vmatpush.bf16.msra.mxu3 %v1368_v62 }
 0x4f8   : > { %1461 = vmatpush.bf16.msra.mxu3 %v1367_v6 }
 0x4fc   : > { %1462 = vmatpush.bf16.msra.mxu3 %v1366_v18 }
 0x4ff   : > { %1413 = vmatmul.bf16.gmra.mxu1 %v2864_v34  ;;  %v2504_v34 = vld [vmem:[%s3409_s2 + $0x48] sm:$0xff] }
 0x500   : > { %1463 = vmatpush.bf16.msra.mxu3 %v1365_v45  ;;  %1656 = vmatpush.bf16.msra.mxu2 %v2504_v34 }
 0x504   : > { %1464 = vmatpush.bf16.msra.mxu3 %v1364_v52 }
 0x508   : > { %1465 = vmatpush.bf16.msra.mxu3 %v1363_v54 }
 0x50c   : > { %1466 = vmatpush.bf16.msra.mxu3 %v1362_v4 }
 0x50f   : > { %1467 = vmatmul.bf16.vlgmr.msra.gmra.mxu3 %v2788_v48  ;;  %1418 = vmatmul.bf16.gmra.mxu1 %v2730_v10  ;;  %v2503_v10 = vld [vmem:[%s3409_s2 + $0x40] sm:$0xff]  ;;  %v1379_v48 = vpop.f32.mrf.mxu1 }
 0x510   : > { %1657 = vmatpush.bf16.msra.mxu2 %v2503_v10 }
 0x51f   : > { %1472 = vmatmul.bf16.gmra.mxu3 %v2802_v56  ;;  %1423 = vmatmul.bf16.gmra.mxu1 %v2735_v13  ;;  %v2509_v13 = vld [vmem:[%s3409_s2 + $0x70] sm:$0xff] }
 0x520   : > { %1878 = vmatpush.bf16.msra.mxu0 %v2509_v13 }
 0x52f   : > { %1477 = vmatmul.bf16.gmra.mxu3 %v2816_v0  ;;  %1428 = vmatmul.bf16.gmra.mxu1 %v2740_v16  ;;  %v1381_v16 = vpop.f32.mrf.mxu1 }
 0x53f   : > { %1482 = vmatmul.bf16.gmra.mxu3 %v2830_v8  ;;  %1433 = vmatmul.bf16.gmra.mxu1 %v2745_v19  ;;  %v1384_v19 = vpop.f32.mrf.mxu1 }
 0x547   : > { %v1386_v56 = vpop.f32.mrf.mxu1 }
 0x54f   : > { %1487 = vmatmul.bf16.gmra.mxu3 %v2844_v20  ;;  %1438 = vmatmul.bf16.gmra.mxu1 %v2750_v22  ;;  %v1389_v0 = vpop.f32.mrf.mxu1 }
 0x557   : > { %v1391_v20 = vpop.f32.mrf.mxu1 }
 0x55f   : > { %1492 = vmatmul.bf16.gmra.mxu3 %v2858_v30  ;;  %1443 = vmatmul.bf16.gmra.mxu1 %v2759_v29  ;;  %v1394_v23 = vpop.f32.mrf.mxu1  ;;  %v2508_v29 = vld [vmem:[%s3409_s2 + $0x68] sm:$0xff] }
 0x560   : > { %1879 = vmatpush.bf16.msra.mxu0 %v2508_v29 }
 0x564   : > { %1880 = vmatpush.bf16.msra.mxu0 %v2507_v57 }
 0x56f   : > { %1497 = vmatmul.bf16.gmra.mxu3 %v2875_v41  ;;  %1448 = vmatmul.bf16.gmra.mxu1 %v2768_v36 }
 0x57f   : > { %1502 = vmatmul.bf16.gmra.mxu3 %v2893_v59  ;;  %v1396_v59 = vpop.f32.mrf.mxu1  ;;  %1453 = vmatmul.bf16.gmra.mxu1 %v2778_v42 }
 0x587   : > { %v1399_v36 = vpop.f32.mrf.mxu1 }
 0x58f   : > { %1507 = vmatmul.bf16.gmra.mxu3 %v2902_v11  ;;  %v1401_v55 = vpop.f32.mrf.mxu1 }
 0x592   : > { %v1468_v8 = vpop.f32.mrf.mxu3 }
 0x593   : > { %v1469_v15 = vadd.f32 %v1468_v8, %v1379_v48 }
 0x597   : > { %v1404_v63 = vpop.f32.mrf.mxu1 }
 0x59a   : > { %v1470_v30 = vpop.f32.mrf.mxu3 }
 0x59b   : > { %v1471_v41 = vadd.f32 %v1470_v30, %v1381_v16 }
 0x59d   : > { %v1548_v50 = vpack.c.bf16 %v1471_v41, %v1469_v15 }
 0x59f   : > { %1512 = vmatmul.bf16.gmra.mxu3 %v2908_v33  ;;  %2383 = vmatmul.msk.bf16.vlgmr.msra.gmra.mxu2 %vm767_vm0, %v1548_v50  ;;  %v1406_v5 = vpop.f32.mrf.mxu1 }
 0x5a2   : > { %v1473_v22 = vpop.f32.mrf.mxu3 }
 0x5a3   : > { %v1474_v26 = vadd.f32 %v1473_v22, %v1384_v19 }
 0x5a7   : > { %v1409_v6 = vpop.f32.mrf.mxu1 }
 0x5aa   : > { %v1475_v11 = vpop.f32.mrf.mxu3 }
 0x5ab   : > { %v1476_v17 = vadd.f32 %v1475_v11, %v1386_v56 }
 0x5ad   : > { %v1549_v14 = vpack.c.bf16 %v1476_v17, %v1474_v26 }
 0x5af   : > { %1517 = vmatmul.bf16.gmra.mxu3 %v2914_v58  ;;  %2384 = vmatmul.msk.bf16.gmra.mxu2 %vm767_vm0, %v1549_v14  ;;  %v1411_v25 = vpop.f32.mrf.mxu1 }
 0x5b2   : > { %v1478_v33 = vpop.f32.mrf.mxu3 }
 0x5b3   : > { %v1479_v31 = vadd.f32 %v1478_v33, %v1389_v0 }
 0x5ba   : > { %v1480_v9 = vpop.f32.mrf.mxu3 }
 0x5bb   : > { %v1481_v42 = vadd.f32 %v1480_v9, %v1391_v20  ;;  %v3210_v20 = vld [vmem:[%s3410_s3 + $0x2] ss:$0 sm:$0xff] }
 0x5bd   : > { %v1550_v35 = vpack.c.bf16 %v1481_v42, %v1479_v31 }
 0x5bf   : > { %1522 = vmatmul.bf16.gmra.mxu3 %v2920_v27  ;;  %2385 = vmatmul.msk.bf16.gmra.mxu2 %vm767_vm0, %v1550_v35  ;;  %v1414_v27 = vpop.f32.mrf.mxu1 }
 0x5c2   : > { %v1483_v62 = vpop.f32.mrf.mxu3 }
 0x5c3   : > { %v1484_v7 = vadd.f32 %v1483_v62, %v1394_v23 }
 0x5ca   : > { %v1485_v32 = vpop.f32.mrf.mxu3 }
 0x5cb   : > { %v1486_v43 = vadd.f32 %v1485_v32, %v1396_v59 }
 0x5cd   : > { %v1551_v58 = vpack.c.bf16 %v1486_v43, %v1484_v7 }
 0x5cf   : > { %1527 = vmatmul.bf16.gmra.mxu3 %v2926_v51  ;;  %2386 = vmatmul.msk.bf16.gmra.mxu2 %vm767_vm0, %v1551_v58  ;;  %v1416_v51 = vpop.f32.mrf.mxu1 }
 0x5d2   : > { %v1488_v46 = vpop.f32.mrf.mxu3 }
 0x5d3   : > { %v1489_v44 = vadd.f32 %v1488_v46, %v1399_v36 }
 0x5da   : > { %v1490_v21 = vpop.f32.mrf.mxu3 }
 0x5db   : > { %v1491_v18 = vadd.f32 %v1490_v21, %v1401_v55 }
 0x5dd   : > { %v1552_v1 = vpack.c.bf16 %v1491_v18, %v1489_v44 }
 0x5df   : > { %1532 = vmatmul.bf16.gmra.mxu3 %v3417_v37  ;;  %2387 = vmatmul.msk.bf16.gmra.mxu2 %vm767_vm0, %v1552_v1  ;;  %v1419_v37 = vpop.f32.mrf.mxu1 }
 0x5e2   : > { %v1493_v39 = vpop.f32.mrf.mxu3 }
 0x5e3   : > { %v1494_v45 = vadd.f32 %v1493_v39, %v1404_v63 }
 0x5e7   : > { %v1421_v3 = vpop.f32.mrf.mxu1 }
 0x5ea   : > { %v1495_v49 = vpop.f32.mrf.mxu3 }
 0x5eb   : > { %v1496_v2 = vadd.f32 %v1495_v49, %v1406_v5 }
 0x5ed   : > { %v1553_v28 = vpack.c.bf16 %v1496_v2, %v1494_v45 }
 0x5ef   : > { %1537 = vmatmul.bf16.gmra.mxu3 %v2938_v38  ;;  %2388 = vmatmul.msk.bf16.gmra.mxu2 %vm767_vm0, %v1553_v28  ;;  %v1424_v60 = vpop.f32.mrf.mxu1 }
 0x5f2   : > { %v1498_v40 = vpop.f32.mrf.mxu3 }
 0x5f3   : > { %v1499_v52 = vadd.f32 %v1498_v40, %v1409_v6 }
 0x5f7   : > { %v1426_v38 = vpop.f32.mrf.mxu1 }
 0x5fa   : > { %v1500_v47 = vpop.f32.mrf.mxu3 }
 0x5fb   : > { %v1501_v53 = vadd.f32 %v1500_v47, %v1411_v25 }
 0x5fd   : > { %v1554_v61 = vpack.c.bf16 %v1501_v53, %v1499_v52 }
 0x5ff   : > { %1542 = vmatmul.bf16.gmra.mxu3 %v2944_v24  ;;  %2389 = vmatmul.msk.bf16.gmra.mxu2 %vm767_vm0, %v1554_v61  ;;  %v1429_v56 = vpop.f32.mrf.mxu1 }
 0x602   : > { %v1503_v54 = vpop.f32.mrf.mxu3 }
 0x603   : > { %v1504_v34 = vadd.f32 %v1503_v54, %v1414_v27 }
 0x607   : > { %v1431_v30 = vpop.f32.mrf.mxu1 }
 0x60a   : > { %v1505_v4 = vpop.f32.mrf.mxu3 }
 0x60b   : > { %v1506_v12 = vadd.f32 %v1505_v4, %v1416_v51 }
 0x60d   : > { %v1555_v10 = vpack.c.bf16 %v1506_v12, %v1504_v34 }
 0x60f   : > { %2390 = vmatmul.msk.bf16.gmra.mxu2 %vm767_vm0, %v1555_v10  ;;  %v1434_v17 = vpop.f32.mrf.mxu1 }
 0x612   : > { %v1508_v13 = vpop.f32.mrf.mxu3 }
 0x613   : > { %v1509_v16 = vadd.f32 %v1508_v13, %v1419_v37 }
 0x617   : > { %v1436_v9 = vpop.f32.mrf.mxu1 }
 0x61a   : > { %v1510_v48 = vpop.f32.mrf.mxu3 }
 0x61b   : > { %v1511_v19 = vadd.f32 %v1510_v48, %v1421_v3 }
 0x61d   : > { %v1556_v0 = vpack.c.bf16 %v1511_v19, %v1509_v16 }
 0x61f   : > { %2391 = vmatmul.msk.bf16.gmra.mxu2 %vm767_vm0, %v1556_v0  ;;  %v1439_v46 = vpop.f32.mrf.mxu1 }
 0x622   : > { %v1513_v24 = vpop.f32.mrf.mxu3  ;;  %v1659_v8 = vpop.f32.mrf.mxu2 }
 0x623   : > { %v1660_v23 = vadd.f32 %v3210_v20, %v1659_v8  ;;  %v1514_v50 = vadd.f32 %v1513_v24, %v1424_v60 }
 0x625   : > { %v1739_v29 = vmax.f32 %v1660_v23, 0.0 }
 0x627   : > { %v1441_v49 = vpop.f32.mrf.mxu1 }
 0x62a   : > { %v1515_v15 = vpop.f32.mrf.mxu3  ;;  %v1661_v41 = vpop.f32.mrf.mxu2 }
 0x62b   : > { %v1516_v22 = vadd.f32 %v1515_v15, %v1426_v38  ;;  %v1662_v59 = vadd.f32 %v3210_v20, %v1661_v41 }
 0x62d   : > { %v1557_v11 = vpack.c.bf16 %v1516_v22, %v1514_v50  ;;  %v1740_v36 = vmax.f32 %v1662_v59, 0.0 }
 0x62f   : > { %v1771_v26 = vpack.c.bf16 %v1740_v36, %v1739_v29  ;;  %2392 = vmatmul.msk.bf16.gmra.mxu2 %vm767_vm0, %v1557_v11  ;;  %v1444_v40 = vpop.f32.mrf.mxu1 }
 0x631   : > { %2424 = vmatmul.msk.bf16.vlgmr.msra.gmra.mxu0 %vm767_vm0, %v1771_v26 }
 0x632   : > { %v1518_v14 = vpop.f32.mrf.mxu3  ;;  %v1664_v33 = vpop.f32.mrf.mxu2 }
 0x633   : > { %v1665_v55 = vadd.f32 %v3210_v20, %v1664_v33  ;;  %v1519_v42 = vadd.f32 %v1518_v14, %v1429_v56 }
 0x635   : > { %v1741_v5 = vmax.f32 %v1665_v55, 0.0 }
 0x637   : > { %v1446_v12 = vpop.f32.mrf.mxu1 }
 0x63a   : > { %v1520_v63 = vpop.f32.mrf.mxu3  ;;  %v1666_v31 = vpop.f32.mrf.mxu2 }
 0x63b   : > { %v1521_v35 = vadd.f32 %v1520_v63, %v1431_v30  ;;  %v1667_v62 = vadd.f32 %v3210_v20, %v1666_v31 }
 0x63d   : > { %v1558_v32 = vpack.c.bf16 %v1521_v35, %v1519_v42  ;;  %v1742_v7 = vmax.f32 %v1667_v62, 0.0 }
 0x63f   : > { %v1772_v43 = vpack.c.bf16 %v1742_v7, %v1741_v5  ;;  %2393 = vmatmul.msk.bf16.gmra.mxu2 %vm767_vm0, %v1558_v32  ;;  %v1449_v24 = vpop.f32.mrf.mxu1 }
 0x641   : > { %2425 = vmatmul.msk.bf16.gmra.mxu0 %vm767_vm0, %v1772_v43 }
 0x642   : > { %v1523_v6 = vpop.f32.mrf.mxu3  ;;  %v1669_v58 = vpop.f32.mrf.mxu2 }
 0x643   : > { %v1670_v25 = vadd.f32 %v3210_v20, %v1669_v58  ;;  %v1524_v18 = vadd.f32 %v1523_v6, %v1434_v17 }
 0x645   : > { %v1743_v39 = vmax.f32 %v1670_v25, 0.0 }
 0x647   : > { %v1451_v22 = vpop.f32.mrf.mxu1 }
 0x64a   : > { %v1525_v21 = vpop.f32.mrf.mxu3  ;;  %v1671_v44 = vpop.f32.mrf.mxu2 }
 0x64b   : > { %v1526_v1 = vadd.f32 %v1525_v21, %v1436_v9  ;;  %v1672_v27 = vadd.f32 %v3210_v20, %v1671_v44 }
 0x64d   : > { %v1559_v57 = vpack.c.bf16 %v1526_v1, %v1524_v18  ;;  %v1744_v51 = vmax.f32 %v1672_v27, 0.0 }
 0x64f   : > { %v1773_v45 = vpack.c.bf16 %v1744_v51, %v1743_v39  ;;  %2394 = vmatmul.msk.bf16.gmra.mxu2 %vm767_vm0, %v1559_v57  ;;  %v1454_v63 = vpop.f32.mrf.mxu1 }
 0x651   : > { %2426 = vmatmul.msk.bf16.gmra.mxu0 %vm767_vm0, %v1773_v45 }
 0x652   : > { %v1528_v2 = vpop.f32.mrf.mxu3  ;;  %v1674_v28 = vpop.f32.mrf.mxu2 }
 0x653   : > { %v1675_v37 = vadd.f32 %v3210_v20, %v1674_v28  ;;  %v1529_v53 = vadd.f32 %v1528_v2, %v1439_v46 }
 0x655   : > { %v1745_v54 = vmax.f32 %v1675_v37, 0.0 }
 0x657   : > { %v1456_v62 = vpop.f32.mrf.mxu1 }
 0x65a   : > { %v1530_v47 = vpop.f32.mrf.mxu3  ;;  %v1676_v52 = vpop.f32.mrf.mxu2 }
 0x65b   : > { %v1531_v61 = vadd.f32 %v1530_v47, %v1441_v49  ;;  %v1677_v3 = vadd.f32 %v3210_v20, %v1676_v52 }
 0x65d   : > { %v1560_v60 = vpack.c.bf16 %v1531_v61, %v1529_v53  ;;  %v1746_v4 = vmax.f32 %v1677_v3, 0.0 }
 0x65f   : > { %v1774_v34 = vpack.c.bf16 %v1746_v4, %v1745_v54  ;;  %2395 = vmatmul.msk.bf16.gmra.mxu2 %vm767_vm0, %v1560_v60 }
 0x661   : > { %2427 = vmatmul.msk.bf16.gmra.mxu0 %vm767_vm0, %v1774_v34 }
 0x662   : > { %v1533_v10 = vpop.f32.mrf.mxu3  ;;  %v1679_v38 = vpop.f32.mrf.mxu2 }
 0x663   : > { %v1680_v13 = vadd.f32 %v3210_v20, %v1679_v38  ;;  %v1534_v19 = vadd.f32 %v1533_v10, %v1444_v40  ;;  %v3251_v40 = vld [vmem:[%s3410_s3 + $0x3] ss:$0 sm:$0xff] }
 0x665   : > { %v1747_v8 = vmax.f32 %v1680_v13, 0.0 }
 0x66a   : > { %v1535_v48 = vpop.f32.mrf.mxu3  ;;  %v1681_v16 = vpop.f32.mrf.mxu2 }
 0x66b   : > { %v1536_v56 = vadd.f32 %v1535_v48, %v1446_v12  ;;  %v1682_v0 = vadd.f32 %v3210_v20, %v1681_v16 }
 0x66d   : > { %v1561_v30 = vpack.c.bf16 %v1536_v56, %v1534_v19  ;;  %v1748_v23 = vmax.f32 %v1682_v0, 0.0 }
 0x66f   : > { %v1775_v15 = vpack.c.bf16 %v1748_v23, %v1747_v8  ;;  %2396 = vmatmul.msk.bf16.gmra.mxu2 %vm767_vm0, %v1561_v30 }
 0x671   : > { %2428 = vmatmul.msk.bf16.gmra.mxu0 %vm767_vm0, %v1775_v15 }
 0x672   : > { %v1538_v41 = vpop.f32.mrf.mxu3  ;;  %v1684_v50 = vpop.f32.mrf.mxu2 }
 0x673   : > { %v1685_v59 = vadd.f32 %v3210_v20, %v1684_v50  ;;  %v1539_v36 = vadd.f32 %v1538_v41, %v1449_v24 }
 0x675   : > { %v1749_v14 = vmax.f32 %v1685_v59, 0.0 }
 0x67a   : > { %v1540_v29 = vpop.f32.mrf.mxu3  ;;  %v1686_v11 = vpop.f32.mrf.mxu2 }
 0x67b   : > { %v1541_v26 = vadd.f32 %v1540_v29, %v1451_v22  ;;  %v1687_v17 = vadd.f32 %v3210_v20, %v1686_v11 }
 0x67d   : > { %v1562_v33 = vpack.c.bf16 %v1541_v26, %v1539_v36  ;;  %v1750_v55 = vmax.f32 %v1687_v17, 0.0 }
 0x67f   : > { %v1776_v9 = vpack.c.bf16 %v1750_v55, %v1749_v14  ;;  %2397 = vmatmul.msk.bf16.gmra.mxu2 %vm767_vm0, %v1562_v33 }
 0x681   : > { %2429 = vmatmul.msk.bf16.gmra.mxu0 %vm767_vm0, %v1776_v9 }
 0x682   : > { %v1543_v31 = vpop.f32.mrf.mxu3  ;;  %v1689_v42 = vpop.f32.mrf.mxu2 }
 0x683   : > { %v1690_v35 = vadd.f32 %v3210_v20, %v1689_v42  ;;  %v1544_v7 = vadd.f32 %v1543_v31, %v1454_v63 }
 0x685   : > { %v1751_v58 = vmax.f32 %v1690_v35, 0.0 }
 0x68a   : > { %v1545_v5 = vpop.f32.mrf.mxu3  ;;  %v1691_v32 = vpop.f32.mrf.mxu2 }
 0x68b   : > { %v1546_v43 = vadd.f32 %v1545_v5, %v1456_v62  ;;  %v1692_v6 = vadd.f32 %v3210_v20, %v1691_v32 }
 0x68d   : > { %v1563_v46 = vpack.c.bf16 %v1546_v43, %v1544_v7  ;;  %v1752_v25 = vmax.f32 %v1692_v6, 0.0 }
 0x68f   : > { %v1777_v21 = vpack.c.bf16 %v1752_v25, %v1751_v58  ;;  %2398 = vmatmul.msk.bf16.gmra.mxu2 %vm767_vm0, %v1563_v46 }
 0x691   : > { %2430 = vmatmul.msk.bf16.gmra.mxu0 %vm767_vm0, %v1777_v21 }
 0x692   : > { %v1694_v44 = vpop.f32.mrf.mxu2 }
 0x693   : > { %v1695_v18 = vadd.f32 %v3210_v20, %v1694_v44 }
 0x695   : > { %v1753_v39 = vmax.f32 %v1695_v18, 0.0 }
 0x69a   : > { %v1696_v1 = vpop.f32.mrf.mxu2 }
 0x69b   : > { %v1697_v27 = vadd.f32 %v3210_v20, %v1696_v1 }
 0x69d   : > { %v1754_v57 = vmax.f32 %v1697_v27, 0.0 }
 0x69f   : > { %v1778_v51 = vpack.c.bf16 %v1754_v57, %v1753_v39 }
 0x6a1   : > { %2431 = vmatmul.msk.bf16.gmra.mxu0 %vm767_vm0, %v1778_v51 }
 0x6a2   : > { %v1699_v49 = vpop.f32.mrf.mxu2 }
 0x6a3   : > { %v1700_v45 = vadd.f32 %v3210_v20, %v1699_v49 }
 0x6a5   : > { %v1755_v37 = vmax.f32 %v1700_v45, 0.0 }
 0x6aa   : > { %v1701_v2 = vpop.f32.mrf.mxu2 }
 0x6ab   : > { %v1702_v28 = vadd.f32 %v3210_v20, %v1701_v2 }
 0x6ad   : > { %v1756_v47 = vmax.f32 %v1702_v28, 0.0 }
 0x6ae   : > { %v1882_v52 = vpop.f32.mrf.mxu0 }
 0x6af   : > { %v1779_v53 = vpack.c.bf16 %v1756_v47, %v1755_v37  ;;  %v1883_v61 = vadd.f32 %v3251_v40, %v1882_v52 }
 0x6b1   : > { %1962 = vst.msk [vmem:[%s3254_s27] sm:$0xff] %vm767_vm0, %v1883_v61  ;;  %2432 = vmatmul.msk.bf16.gmra.mxu0 %vm767_vm0, %v1779_v53 }
 0x6b2   : > { %v1704_v3 = vpop.f32.mrf.mxu2 }
 0x6b3   : > { %v1705_v4 = vadd.f32 %v3210_v20, %v1704_v3 }
 0x6b5   : > { %v1757_v10 = vmax.f32 %v1705_v4, 0.0 }
 0x6b6   : > { %v1884_v54 = vpop.f32.mrf.mxu0 }
 0x6b7   : > { %v1885_v60 = vadd.f32 %v3251_v40, %v1884_v54 }
 0x6b9   : > { %1963 = vst.msk [vmem:[%s3254_s27 + $0x8] sm:$0xff] %vm767_vm0, %v1885_v60 }
 0x6ba   : > { %v1706_v34 = vpop.f32.mrf.mxu2 }
 0x6bb   : > { %v1707_v12 = vadd.f32 %v3210_v20, %v1706_v34 }
 0x6bd   : > { %v1758_v38 = vmax.f32 %v1707_v12, 0.0 }
 0x6be   : > { %v1887_v13 = vpop.f32.mrf.mxu0 }
 0x6bf   : > { %v1780_v48 = vpack.c.bf16 %v1758_v38, %v1757_v10  ;;  %v1888_v16 = vadd.f32 %v3251_v40, %v1887_v13 }
 0x6c1   : > { %1964 = vst.msk [vmem:[%s3254_s27 + $0x10] sm:$0xff] %vm767_vm0, %v1888_v16  ;;  %2433 = vmatmul.msk.bf16.gmra.mxu0 %vm767_vm0, %v1780_v48 }
 0x6c2   : > { %v1709_v19 = vpop.f32.mrf.mxu2 }
 0x6c3   : > { %v1710_v24 = vadd.f32 %v3210_v20, %v1709_v19 }
 0x6c5   : > { %v1759_v23 = vmax.f32 %v1710_v24, 0.0 }
 0x6c6   : > { %v1889_v56 = vpop.f32.mrf.mxu0 }
 0x6c7   : > { %v1890_v0 = vadd.f32 %v3251_v40, %v1889_v56 }
 0x6c9   : > { %1965 = vst.msk [vmem:[%s3254_s27 + $0x18] sm:$0xff] %vm767_vm0, %v1890_v0 }
 0x6ca   : > { %v1711_v8 = vpop.f32.mrf.mxu2 }
 0x6cb   : > { %v1712_v30 = vadd.f32 %v3210_v20, %v1711_v8 }
 0x6cd   : > { %v1760_v15 = vmax.f32 %v1712_v30, 0.0 }
 0x6ce   : > { %v1892_v41 = vpop.f32.mrf.mxu0 }
 0x6cf   : > { %v1781_v50 = vpack.c.bf16 %v1760_v15, %v1759_v23  ;;  %v1893_v22 = vadd.f32 %v3251_v40, %v1892_v41 }
 0x6d1   : > { %1966 = vst.msk [vmem:[%s3254_s27 + $0x20] sm:$0xff] %vm767_vm0, %v1893_v22  ;;  %2434 = vmatmul.msk.bf16.gmra.mxu0 %vm767_vm0, %v1781_v50 }
 0x6d2   : > { %v1714_v59 = vpop.f32.mrf.mxu2 }
 0x6d3   : > { %v1715_v36 = vadd.f32 %v3210_v20, %v1714_v59 }
 0x6d5   : > { %v1761_v14 = vmax.f32 %v1715_v36, 0.0 }
 0x6d6   : > { %v1894_v29 = vpop.f32.mrf.mxu0 }
 0x6d7   : > { %v1895_v11 = vadd.f32 %v3251_v40, %v1894_v29 }
 0x6d9   : > { %1967 = vst.msk [vmem:[%s3254_s27 + $0x28] sm:$0xff] %vm767_vm0, %v1895_v11 }
 0x6da   : > { %v1716_v26 = vpop.f32.mrf.mxu2 }
 0x6db   : > { %v1717_v17 = vadd.f32 %v3210_v20, %v1716_v26 }
 0x6dd   : > { %v1762_v33 = vmax.f32 %v1717_v17, 0.0 }
 0x6de   : > { %v1897_v55 = vpop.f32.mrf.mxu0 }
 0x6df   : > { %v1782_v9 = vpack.c.bf16 %v1762_v33, %v1761_v14  ;;  %v1898_v63 = vadd.f32 %v3251_v40, %v1897_v55 }
 0x6e1   : > { %1968 = vst.msk [vmem:[%s3254_s27 + $0x30] sm:$0xff] %vm767_vm0, %v1898_v63  ;;  %2435 = vmatmul.msk.bf16.gmra.mxu0 %vm767_vm0, %v1782_v9 }
 0x6e2   : > { %v1719_v31 = vpop.f32.mrf.mxu2 }
 0x6e3   : > { %v1720_v62 = vadd.f32 %v3210_v20, %v1719_v31 }
 0x6e5   : > { %v1763_v7 = vmax.f32 %v1720_v62, 0.0 }
 0x6e6   : > { %v1899_v42 = vpop.f32.mrf.mxu0 }
 0x6e7   : > { %v1900_v35 = vadd.f32 %v3251_v40, %v1899_v42 }
 0x6e9   : > { %1969 = vst.msk [vmem:[%s3254_s27 + $0x38] sm:$0xff] %vm767_vm0, %v1900_v35 }
 0x6ea   : > { %v1721_v5 = vpop.f32.mrf.mxu2 }
 0x6eb   : > { %v1722_v32 = vadd.f32 %v3210_v20, %v1721_v5 }
 0x6ed   : > { %v1764_v43 = vmax.f32 %v1722_v32, 0.0 }
 0x6ee   : > { %v1902_v6 = vpop.f32.mrf.mxu0 }
 0x6ef   : > { %v1783_v58 = vpack.c.bf16 %v1764_v43, %v1763_v7  ;;  %v1903_v46 = vadd.f32 %v3251_v40, %v1902_v6 }
 0x6f1   : > { %1970 = vst.msk [vmem:[%s3254_s27 + $0x40] sm:$0xff] %vm767_vm0, %v1903_v46  ;;  %2436 = vmatmul.msk.bf16.gmra.mxu0 %vm767_vm0, %v1783_v58 }
 0x6f2   : > { %v1724_v25 = vpop.f32.mrf.mxu2 }
 0x6f3   : > { %v1725_v18 = vadd.f32 %v3210_v20, %v1724_v25 }
 0x6f5   : > { %v1765_v39 = vmax.f32 %v1725_v18, 0.0 }
 0x6f6   : > { %v1904_v21 = vpop.f32.mrf.mxu0 }
 0x6f7   : > { %v1905_v44 = vadd.f32 %v3251_v40, %v1904_v21 }
 0x6f9   : > { %1971 = vst.msk [vmem:[%s3254_s27 + $0x48] sm:$0xff] %vm767_vm0, %v1905_v44 }
 0x6fa   : > { %v1726_v1 = vpop.f32.mrf.mxu2 }
 0x6fb   : > { %v1727_v27 = vadd.f32 %v3210_v20, %v1726_v1 }
 0x6fd   : > { %v1766_v57 = vmax.f32 %v1727_v27, 0.0 }
 0x6fe   : > { %v1907_v51 = vpop.f32.mrf.mxu0 }
 0x6ff   : > { %v1784_v49 = vpack.c.bf16 %v1766_v57, %v1765_v39  ;;  %v1908_v45 = vadd.f32 %v3251_v40, %v1907_v51 }
 0x701   : > { %1972 = vst.msk [vmem:[%s3254_s27 + $0x50] sm:$0xff] %vm767_vm0, %v1908_v45  ;;  %2437 = vmatmul.msk.bf16.gmra.mxu0 %vm767_vm0, %v1784_v49 }
 0x702   : > { %v1729_v2 = vpop.f32.mrf.mxu2 }
 0x703   : > { %v1730_v47 = vadd.f32 %v3210_v20, %v1729_v2 }
 0x705   : > { %v1767_v61 = vmax.f32 %v1730_v47, 0.0 }
 0x706   : > { %v1909_v28 = vpop.f32.mrf.mxu0 }
 0x707   : > { %v1910_v37 = vadd.f32 %v3251_v40, %v1909_v28 }
 0x709   : > { %1973 = vst.msk [vmem:[%s3254_s27 + $0x58] sm:$0xff] %vm767_vm0, %v1910_v37 }
 0x70a   : > { %v1731_v52 = vpop.f32.mrf.mxu2 }
 0x70b   : > { %v1732_v53 = vadd.f32 %v3210_v20, %v1731_v52 }
 0x70d   : > { %v1768_v3 = vmax.f32 %v1732_v53, 0.0 }
 0x70e   : > { %v1912_v54 = vpop.f32.mrf.mxu0 }
 0x70f   : > { %v1785_v60 = vpack.c.bf16 %v1768_v3, %v1767_v61  ;;  %v1913_v4 = vadd.f32 %v3251_v40, %v1912_v54 }
 0x711   : > { %1974 = vst.msk [vmem:[%s3254_s27 + $0x60] sm:$0xff] %vm767_vm0, %v1913_v4  ;;  %2438 = vmatmul.msk.bf16.gmra.mxu0 %vm767_vm0, %v1785_v60 }
 0x712   : > { %v1734_v34 = vpop.f32.mrf.mxu2 }
 0x713   : > { %v1735_v38 = vadd.f32 %v3210_v20, %v1734_v34 }
 0x715   : > { %v1769_v16 = vmax.f32 %v1735_v38, 0.0 }
 0x716   : > { %v1914_v12 = vpop.f32.mrf.mxu0 }
 0x717   : > { %v1915_v10 = vadd.f32 %v3251_v40, %v1914_v12 }
 0x719   : > { %1975 = vst.msk [vmem:[%s3254_s27 + $0x68] sm:$0xff] %vm767_vm0, %v1915_v10 }
 0x71a   : > { %v1736_v13 = vpop.f32.mrf.mxu2 }
 0x71b   : > { %v1737_v48 = vadd.f32 %v3210_v20, %v1736_v13 }
 0x71d   : > { %v1770_v19 = vmax.f32 %v1737_v48, 0.0 }
 0x71e   : > { %v1917_v56 = vpop.f32.mrf.mxu0 }
 0x71f   : > { %v1786_v0 = vpack.c.bf16 %v1770_v19, %v1769_v16  ;;  %v1918_v24 = vadd.f32 %v3251_v40, %v1917_v56 }
 0x721   : > { %1976 = vst.msk [vmem:[%s3254_s27 + $0x70] sm:$0xff] %vm767_vm0, %v1918_v24  ;;  %2439 = vmatmul.msk.bf16.gmra.mxu0 %vm767_vm0, %v1786_v0 }
 0x726   : > { %v1919_v8 = vpop.f32.mrf.mxu0 }
 0x727   : > { %v1920_v30 = vadd.f32 %v3251_v40, %v1919_v8 }
 0x729   : > { %1977 = vst.msk [vmem:[%s3254_s27 + $0x78] sm:$0xff] %vm767_vm0, %v1920_v30 }
 0x72e   : > { %v1922_v20 = vpop.f32.mrf.mxu0 }
 0x72f   : > { %v1923_v23 = vadd.f32 %v3251_v40, %v1922_v20 }
 0x731   : > { %1978 = vst.msk [vmem:[%s3254_s27 + $0x80] sm:$0xff] %vm767_vm0, %v1923_v23 }
 0x736   : > { %v1924_v15 = vpop.f32.mrf.mxu0 }
 0x737   : > { %v1925_v41 = vadd.f32 %v3251_v40, %v1924_v15 }
 0x739   : > { %1979 = vst.msk [vmem:[%s3254_s27 + $0x88] sm:$0xff] %vm767_vm0, %v1925_v41 }
 0x73e   : > { %v1927_v50 = vpop.f32.mrf.mxu0 }
 0x73f   : > { %v1928_v22 = vadd.f32 %v3251_v40, %v1927_v50 }
 0x741   : > { %1980 = vst.msk [vmem:[%s3254_s27 + $0x90] sm:$0xff] %vm767_vm0, %v1928_v22 }
 0x746   : > { %v1929_v59 = vpop.f32.mrf.mxu0 }
 0x747   : > { %v1930_v29 = vadd.f32 %v3251_v40, %v1929_v59 }
 0x749   : > { %1981 = vst.msk [vmem:[%s3254_s27 + $0x98] sm:$0xff] %vm767_vm0, %v1930_v29 }
 0x74e   : > { %v1932_v11 = vpop.f32.mrf.mxu0 }
 0x74f   : > { %v1933_v36 = vadd.f32 %v3251_v40, %v1932_v11 }
 0x751   : > { %1982 = vst.msk [vmem:[%s3254_s27 + $0xa0] sm:$0xff] %vm767_vm0, %v1933_v36 }
 0x756   : > { %v1934_v26 = vpop.f32.mrf.mxu0 }
 0x757   : > { %v1935_v17 = vadd.f32 %v3251_v40, %v1934_v26 }
 0x759   : > { %1983 = vst.msk [vmem:[%s3254_s27 + $0xa8] sm:$0xff] %vm767_vm0, %v1935_v17 }
 0x75e   : > { %v1937_v14 = vpop.f32.mrf.mxu0 }
 0x75f   : > { %v1938_v33 = vadd.f32 %v3251_v40, %v1937_v14 }
 0x761   : > { %1984 = vst.msk [vmem:[%s3254_s27 + $0xb0] sm:$0xff] %vm767_vm0, %v1938_v33 }
 0x766   : > { %v1939_v55 = vpop.f32.mrf.mxu0 }
 0x767   : > { %v1940_v9 = vadd.f32 %v3251_v40, %v1939_v55 }
 0x769   : > { %1985 = vst.msk [vmem:[%s3254_s27 + $0xb8] sm:$0xff] %vm767_vm0, %v1940_v9 }
 0x76e   : > { %v1942_v63 = vpop.f32.mrf.mxu0 }
 0x76f   : > { %v1943_v31 = vadd.f32 %v3251_v40, %v1942_v63 }
 0x771   : > { %1986 = vst.msk [vmem:[%s3254_s27 + $0xc0] sm:$0xff] %vm767_vm0, %v1943_v31 }
 0x776   : > { %v1944_v42 = vpop.f32.mrf.mxu0 }
 0x777   : > { %v1945_v35 = vadd.f32 %v3251_v40, %v1944_v42 }
 0x779   : > { %1987 = vst.msk [vmem:[%s3254_s27 + $0xc8] sm:$0xff] %vm767_vm0, %v1945_v35 }
 0x77e   : > { %v1947_v62 = vpop.f32.mrf.mxu0 }
 0x77f   : > { %v1948_v5 = vadd.f32 %v3251_v40, %v1947_v62 }
 0x781   : > { %1988 = vst.msk [vmem:[%s3254_s27 + $0xd0] sm:$0xff] %vm767_vm0, %v1948_v5 }
 0x786   : > { %v1949_v32 = vpop.f32.mrf.mxu0 }
 0x787   : > { %v1950_v7 = vadd.f32 %v3251_v40, %v1949_v32 }
 0x789   : > { %1989 = vst.msk [vmem:[%s3254_s27 + $0xd8] sm:$0xff] %vm767_vm0, %v1950_v7 }
 0x78e   : > { %v1952_v43 = vpop.f32.mrf.mxu0 }
 0x78f   : > { %v1953_v6 = vadd.f32 %v3251_v40, %v1952_v43 }
 0x791   : > { %1990 = vst.msk [vmem:[%s3254_s27 + $0xe0] sm:$0xff] %vm767_vm0, %v1953_v6 }
 0x796   : > { %v1954_v58 = vpop.f32.mrf.mxu0 }
 0x797   : > { %v1955_v46 = vadd.f32 %v3251_v40, %v1954_v58 }
 0x799   : > { %1991 = vst.msk [vmem:[%s3254_s27 + $0xe8] sm:$0xff] %vm767_vm0, %v1955_v46 }
 0x79e   : > { %v1957_v25 = vpop.f32.mrf.mxu0 }
 0x79f   : > { %v1958_v21 = vadd.f32 %v3251_v40, %v1957_v25 }
 0x7a1   : > { %1992 = vst.msk [vmem:[%s3254_s27 + $0xf0] sm:$0xff] %vm767_vm0, %v1958_v21 }
 0x7a6   : > { %v1959_v44 = vpop.f32.mrf.mxu0 }
 0x7a7   : > { %v1960_v18 = vadd.f32 %v3251_v40, %v1959_v44 }
 0x7a9   : > { %1993 = vst.msk [vmem:[%s3254_s27 + $0xf8] sm:$0xff] %vm767_vm0, %v1960_v18 }
 0x7aa   : > { %2596 = shalt.err (!%p2593_p3)
}
 0x7ab   : > { %s2633_s14 = smov 128   ;;  %s2634_s22 = smov 8  }
 0x7ac   : > { %2524 = dma.vmem_to_hbm [thread:$0]  (%p2698_p5), %s2008_s6, 4096, %s2010_s7, %s1995_s19, %s2633_s14, %s2633_s14, %s2634_s22  }
 0x7ad PF: > { %p2530_p4 = scmp.ge.s32.totalorder %s2631_s18, 2  ;;  %s2024_s23 = sand.u32 1, %s2619_s15  }
 0x7ae   : > { %s2025_s27 = scalar_lea.sflag [#allocation3], %s2024_s23 }
 0x7af   : > { %p2527_p7 = pnand %p2530_p4, %p2702_p6 }
 0x7b1   : > { %p2528_p8 = pneg %p2527_p7 }
 0x7b3   : > { %2614 = dma.done.wait (%p2528_p8), %s2025_s27, 4096  }
 0x7b4   : > { %2616 = vsyncadd (%p2528_p8), %s2025_s27, 4294963200  ;;  %p14_p9 = scmp.ge.s32.totalorder %s2685_s21, 4   ;;  %s3418_s15 = smov %s2623_s16 }
 0x7b5   : > { %s3419_s16 = smov %s2627_s17  ;;  %s3420_s17 = smov %s2696_s24 }
 0x7b6   : > { %s3421_s18 = smov %s2685_s21  ;;  %16 = sbr.rel (!%p14_p9) target bundleno = 3 (0x3), region = 80 }
 0x7bb   :  { %2031 = vsyncpa [#allocation3], 1 }
 0x7bc   :  { %2033 = vsyncpa [#allocation3 + $0x1], 1 }

</bundles_post_ra>
